<compile_context>
chip_gen: v7x
topology: tpu7x:2x2x1
jax: 0.10.0
libtpu: 0.0.40
codegen_flags: <defaults>
</compile_context>

<pallas_src>
import functools

import jax
import jax.numpy as jnp
from jax.experimental import pallas as pl
from jax.experimental.pallas import tpu as pltpu

TXT_DIM = 768
IMG_DIM = 768
HID_DIM = 512
NUM_CLASSES = 1          # module default
LANE = 128


def _round_up(x, m):
    return ((x + m - 1) // m) * m


# ----------------------------- Pallas kernel -------------------------------
def fusion_head_kernel(txt_ref, img_ref, w1t_ref, w1i_ref, b1_ref,
                       w2_ref, b2_ref, out_ref, *, num_valid):
    # txt_ref/img_ref: [TILE_B, 768] bf16
    # w1t_ref/w1i_ref: [768, 512] bf16 (rows 0:768 / 768:1536 of fc1.weight.T)
    # b1_ref: [1, 512] f32; w2_ref: [512, C_pad] bf16; b2_ref: [1, C_pad] f32
    # num_valid: static number of real classes (<= C_pad)

    # fc1 on the concatenated features via split matmul (== concat + matmul)
    h = jnp.dot(txt_ref[...], w1t_ref[...], preferred_element_type=jnp.float32)
    h = h + jnp.dot(img_ref[...], w1i_ref[...], preferred_element_type=jnp.float32)
    h = jnp.maximum(h + b1_ref[...], 0.0)                    # bias + relu (f32)

    # fc2 (classes zero-padded to lane width; pads are masked out below)
    logits = jnp.dot(h.astype(w2_ref.dtype), w2_ref[...],
                     preferred_element_type=jnp.float32) + b2_ref[...]

    # numerically stable masked softmax over the real classes (dim=1).
    # The max over all columns (pads have logit 0) is a valid shift; padded
    # columns are zeroed after exp so they contribute nothing to the sum.
    col = jax.lax.broadcasted_iota(jnp.int32, logits.shape, 1)
    valid = col < num_valid
    m = jnp.max(logits, axis=1, keepdims=True)
    e = jnp.where(valid, jnp.exp(logits - m), 0.0)
    denom = jnp.sum(e, axis=1, keepdims=True)
    out_ref[...] = e * (1.0 / denom)                          # exact normalize


def fusion_head(text_features, image_features, params, *, tile_b=256):
    B = text_features.shape[0]
    C = params["w2"].shape[1]
    C_pad = _round_up(max(C, LANE), LANE)          # lane-dense output width
    TILE_B = tile_b if B >= tile_b else _round_up(B, 8)
    B_pad = _round_up(B, TILE_B)

    # bf16 activations into the MXU (weights already stored bf16); pad batch.
    txt = jnp.pad(text_features.astype(jnp.bfloat16), ((0, B_pad - B), (0, 0)))
    img = jnp.pad(image_features.astype(jnp.bfloat16), ((0, B_pad - B), (0, 0)))

    # Pad fc2 weight/bias with zeros to a lane-dense class count; padded
    # classes are excluded inside the kernel via an iota mask.
    w2 = jnp.pad(params["w2"], ((0, 0), (0, C_pad - C)))
    b2 = jnp.pad(params["b2"], ((0, 0), (0, C_pad - C)))

    kernel = functools.partial(fusion_head_kernel, num_valid=C)

    out = pl.pallas_call(
        kernel,
        out_shape=jax.ShapeDtypeStruct((B_pad, C_pad), jnp.float32),
        grid=(B_pad // TILE_B,),
        in_specs=[
            pl.BlockSpec((TILE_B, TXT_DIM), lambda i: (i, 0)),    # text tile
            pl.BlockSpec((TILE_B, IMG_DIM), lambda i: (i, 0)),    # image tile
            pl.BlockSpec((TXT_DIM, HID_DIM), lambda i: (0, 0)),   # weights stay
            pl.BlockSpec((IMG_DIM, HID_DIM), lambda i: (0, 0)),   # VMEM-resident
            pl.BlockSpec((1, HID_DIM), lambda i: (0, 0)),
            pl.BlockSpec((HID_DIM, C_pad), lambda i: (0, 0)),
            pl.BlockSpec((1, C_pad), lambda i: (0, 0)),
        ],
        out_specs=pl.BlockSpec((TILE_B, C_pad), lambda i: (i, 0)),
        compiler_params=pltpu.CompilerParams(
            dimension_semantics=("parallel",),        # 2-TC sharding on v7x
            vmem_limit_bytes=32 * 1024 * 1024,        # sized for v7x VMEM
        ),
    )(txt, img, params["w1_txt"], params["w1_img"], params["b1"], w2, b2)

    return out[:B, :C]


# Pure-JAX reference mirroring the kernel math (bf16 dots, f32 accumulate).
def fusion_head_reference(txt, img, params):
    t = txt.astype(jnp.bfloat16)
    i = img.astype(jnp.bfloat16)
    h = (jnp.dot(t, params["w1_txt"], preferred_element_type=jnp.float32)
         + jnp.dot(i, params["w1_img"], preferred_element_type=jnp.float32)
         + params["b1"])
    h = jnp.maximum(h, 0.0)
    logits = jnp.dot(h.astype(jnp.bfloat16), params["w2"],
                     preferred_element_type=jnp.float32) + params["b2"]
    return jax.nn.softmax(logits, axis=1)


# --------------------- deterministic backbone stand-ins --------------------
# TODO(synk): the real module uses frozen pretrained HuggingFace ViT / BERT
# encoders; those cannot be reproduced without checkpoints, so small
# deterministic pooling+projection stubs produce the 768-d pooler outputs.
def text_encoder_stub(input_ids, attention_mask, params):
    emb = jnp.take(params["txt_emb"], input_ids, axis=0)           # [B, S, 768]
    mask = attention_mask[..., None].astype(jnp.float32)           # [B, S, 1]
    pooled = (emb * mask).sum(axis=1) / jnp.maximum(mask.sum(axis=1), 1.0)
    return jnp.tanh(pooled @ params["txt_proj"])                   # [B, 768]


def image_encoder_stub(pixel, params):
    B = pixel.shape[0]
    flat = pixel.reshape(B, -1).astype(jnp.float32)                # [B, 3*H*W]
    return jnp.tanh(flat @ params["img_proj"])                     # [B, 768]


# ------------------------------- full model --------------------------------
def mlp_fusion_model(pixel, input_ids, attention_mask, params):
    text_features = text_encoder_stub(input_ids, attention_mask, params)
    image_features = image_encoder_stub(pixel, params)
    return fusion_head(text_features, image_features, params)


def init_params(key, pixel_shape, vocab_size=100, num_classes=NUM_CLASSES):
    ks = jax.random.split(key, 7)
    pix_flat = pixel_shape[1] * pixel_shape[2] * pixel_shape[3]
    scale = 0.02
    return {
        # stub encoder params (f32)
        "txt_emb":  scale * jax.random.normal(ks[0], (vocab_size, TXT_DIM), jnp.float32),
        "txt_proj": scale * jax.random.normal(ks[1], (TXT_DIM, TXT_DIM), jnp.float32),
        "img_proj": scale * jax.random.normal(ks[2], (pix_flat, IMG_DIM), jnp.float32),
        # fusion head (fc1: Linear(1536,512) split into text/image halves; fc2)
        # weights stored bf16 once (no per-call casts); biases stay f32.
        "w1_txt": (scale * jax.random.normal(ks[3], (TXT_DIM, HID_DIM), jnp.float32)).astype(jnp.bfloat16),
        "w1_img": (scale * jax.random.normal(ks[4], (IMG_DIM, HID_DIM), jnp.float32)).astype(jnp.bfloat16),
        "b1":     jnp.zeros((1, HID_DIM), jnp.float32),
        "w2":     (scale * jax.random.normal(ks[5], (HID_DIM, num_classes), jnp.float32)).astype(jnp.bfloat16),
        "b2":     jnp.zeros((1, num_classes), jnp.float32),
    }


if __name__ == "__main__":
    key = jax.random.PRNGKey(0)
    k_pix, k_ids, k_par, k_par2 = jax.random.split(key, 4)

    B, S, H, W = 2, 8, 16, 16
    pixel = jax.random.normal(k_pix, (B, 3, H, W), jnp.float32)     # NCHW
    input_ids = jax.random.randint(k_ids, (B, S), 0, 100, jnp.int32)
    attention_mask = jnp.ones((B, S), jnp.int32)

    # Default head (num_classes=1, as in the PyTorch module).
    params = init_params(k_par, pixel.shape)
    out = mlp_fusion_model(pixel, input_ids, attention_mask, params)
    out = jax.block_until_ready(out)
    assert out.shape == (B, NUM_CLASSES)
    assert bool(jnp.all(jnp.isfinite(out)))
    assert bool(jnp.allclose(out.sum(axis=1), 1.0, atol=2e-3))
    # softmax over a single class is identically 1 (matches PyTorch semantics)
    assert bool(jnp.allclose(out, 1.0, atol=2e-3))

    # Exercise a non-degenerate class count to validate the padded-softmax path.
    params5 = init_params(k_par2, pixel.shape, num_classes=5)
    txt5 = text_encoder_stub(input_ids, attention_mask, params5)
    img5 = image_encoder_stub(pixel, params5)
    out5 = jax.block_until_ready(fusion_head(txt5, img5, params5))
    ref5 = fusion_head_reference(txt5, img5, params5)
    assert out5.shape == (B, 5)
    assert bool(jnp.all(jnp.isfinite(out5)))
    assert bool(jnp.allclose(out5.sum(axis=1), 1.0, atol=2e-3))
    assert bool(jnp.allclose(out5, ref5, atol=2e-3))

    print("KERNEL_OK")
</pallas_src>

<mosaic_0001>
module attributes {stable_mosaic.version = 11 : i64} {
  func.func @fusion_head_kernel(%arg0: i32, %arg1: memref<8x768xbf16, #tpu.memory_space<vmem>>, %arg2: memref<8x768xbf16, #tpu.memory_space<vmem>>, %arg3: memref<768x512xbf16, #tpu.memory_space<vmem>>, %arg4: memref<768x512xbf16, #tpu.memory_space<vmem>>, %arg5: memref<1x512xf32, #tpu.memory_space<vmem>>, %arg6: memref<512x128xbf16, #tpu.memory_space<vmem>>, %arg7: memref<1x128xf32, #tpu.memory_space<vmem>>, %arg8: memref<8x128xf32, #tpu.memory_space<vmem>>) attributes {dimension_semantics = [#tpu.dimension_semantics<parallel>], iteration_bounds = array<i64: 1>, scalar_prefetch = 0 : i64, scratch_operands = 0 : i64, tpu.core_type = #tpu.core_type<tc>, window_params = [{transform_indices = @transform_0, window_bounds = array<i64: 8, 768>}, {transform_indices = @transform_1, window_bounds = array<i64: 8, 768>}, {pipeline_mode = #tpu.pipeline_mode<synchronous>, transform_indices = @transform_2, window_bounds = array<i64: 768, 512>}, {pipeline_mode = #tpu.pipeline_mode<synchronous>, transform_indices = @transform_3, window_bounds = array<i64: 768, 512>}, {pipeline_mode = #tpu.pipeline_mode<synchronous>, transform_indices = @transform_4, window_bounds = array<i64: 1, 512>}, {pipeline_mode = #tpu.pipeline_mode<synchronous>, transform_indices = @transform_5, window_bounds = array<i64: 512, 128>}, {pipeline_mode = #tpu.pipeline_mode<synchronous>, transform_indices = @transform_6, window_bounds = array<i64: 1, 128>}, {transform_indices = @transform_7, window_bounds = array<i64: 8, 128>}]} {
    %c0 = arith.constant 0 : index
    %c0_0 = arith.constant 0 : index
    %0 = vector.load %arg1[%c0, %c0_0] : memref<8x768xbf16, #tpu.memory_space<vmem>>, vector<8x768xbf16>
    %c0_1 = arith.constant 0 : index
    %c0_2 = arith.constant 0 : index
    %1 = vector.load %arg3[%c0_1, %c0_2] : memref<768x512xbf16, #tpu.memory_space<vmem>>, vector<768x512xbf16>
    %cst = arith.constant dense<0.000000e+00> : vector<8x512xf32>
    %2 = tpu.matmul %0, %1, %cst {dimension_numbers = #tpu.dot_dimension_numbers<[1], [0], [0], [1], [0, 0, 1, 1], [], []>} : vector<8x768xbf16>, vector<768x512xbf16>, vector<8x512xf32> -> vector<8x512xf32>
    %c0_3 = arith.constant 0 : index
    %c0_4 = arith.constant 0 : index
    %3 = vector.load %arg2[%c0_3, %c0_4] : memref<8x768xbf16, #tpu.memory_space<vmem>>, vector<8x768xbf16>
    %c0_5 = arith.constant 0 : index
    %c0_6 = arith.constant 0 : index
    %4 = vector.load %arg4[%c0_5, %c0_6] : memref<768x512xbf16, #tpu.memory_space<vmem>>, vector<768x512xbf16>
    %cst_7 = arith.constant dense<0.000000e+00> : vector<8x512xf32>
    %5 = tpu.matmul %3, %4, %cst_7 {dimension_numbers = #tpu.dot_dimension_numbers<[1], [0], [0], [1], [0, 0, 1, 1], [], []>} : vector<8x768xbf16>, vector<768x512xbf16>, vector<8x512xf32> -> vector<8x512xf32>
    %6 = arith.addf %2, %5 : vector<8x512xf32>
    %c0_8 = arith.constant 0 : index
    %c0_9 = arith.constant 0 : index
    %7 = vector.load %arg5[%c0_8, %c0_9] : memref<1x512xf32, #tpu.memory_space<vmem>>, vector<1x512xf32>
    %8 = vector.broadcast %7 : vector<1x512xf32> to vector<8x512xf32>
    %9 = arith.addf %6, %8 : vector<8x512xf32>
    %cst_10 = arith.constant 0.000000e+00 : f32
    %10 = vector.broadcast %cst_10 : f32 to vector<8x512xf32>
    %11 = arith.maximumf %9, %10 : vector<8x512xf32>
    %12 = arith.truncf %11 : vector<8x512xf32> to vector<8x512xbf16>
    %c0_11 = arith.constant 0 : index
    %c0_12 = arith.constant 0 : index
    %13 = vector.load %arg6[%c0_11, %c0_12] : memref<512x128xbf16, #tpu.memory_space<vmem>>, vector<512x128xbf16>
    %cst_13 = arith.constant dense<0.000000e+00> : vector<8x128xf32>
    %14 = tpu.matmul %12, %13, %cst_13 {dimension_numbers = #tpu.dot_dimension_numbers<[1], [0], [0], [1], [0, 0, 1, 1], [], []>} : vector<8x512xbf16>, vector<512x128xbf16>, vector<8x128xf32> -> vector<8x128xf32>
    %c0_14 = arith.constant 0 : index
    %c0_15 = arith.constant 0 : index
    %15 = vector.load %arg7[%c0_14, %c0_15] : memref<1x128xf32, #tpu.memory_space<vmem>>, vector<1x128xf32>
    %16 = vector.broadcast %15 : vector<1x128xf32> to vector<8x128xf32>
    %17 = arith.addf %14, %16 : vector<8x128xf32>
    %18 = tpu.iota {dimensions = array<i32: 1>} : vector<8x128xi32>
    %c1_i32 = arith.constant 1 : i32
    %19 = vector.broadcast %c1_i32 : i32 to vector<8x128xi32>
    %20 = arith.cmpi slt, %18, %19 : vector<8x128xi32>
    %cst_16 = arith.constant dense<0xFF800000> : vector<8xf32>
    %21 = vector.multi_reduction <maximumf>, %17, %cst_16 [1] : vector<8x128xf32> to vector<8xf32>
    %22 = vector.shape_cast %21 : vector<8xf32> to vector<8x1xf32>
    %23 = vector.broadcast %22 : vector<8x1xf32> to vector<8x128xf32>
    %24 = arith.subf %17, %23 : vector<8x128xf32>
    %25 = math.exp %24 : vector<8x128xf32>
    %cst_17 = arith.constant 0.000000e+00 : f32
    %26 = vector.broadcast %cst_17 : f32 to vector<8x128xf32>
    %27 = arith.select %20, %25, %26 : vector<8x128xi1>, vector<8x128xf32>
    %cst_18 = arith.constant dense<0.000000e+00> : vector<8xf32>
    %28 = vector.multi_reduction <add>, %27, %cst_18 [1] : vector<8x128xf32> to vector<8xf32>
    %29 = vector.shape_cast %28 : vector<8xf32> to vector<8x1xf32>
    %cst_19 = arith.constant 1.000000e+00 : f32
    %30 = vector.broadcast %cst_19 : f32 to vector<8x1xf32>
    %31 = arith.divf %30, %29 : vector<8x1xf32>
    %32 = vector.broadcast %31 : vector<8x1xf32> to vector<8x128xf32>
    %33 = arith.mulf %27, %32 : vector<8x128xf32>
    %c0_20 = arith.constant 0 : index
    %c0_21 = arith.constant 0 : index
    %34 = vector.load %arg8[%c0_20, %c0_21] : memref<8x128xf32, #tpu.memory_space<vmem>>, vector<8x128xf32>
    tpu.vector_store %arg8[%c0_20, %c0_21], %33 {strides = array<i32>} : memref<8x128xf32, #tpu.memory_space<vmem>>, vector<8x128xf32>,
    return
  }
  func.func @transform_0(%arg0: i32) -> (i32, i32) {
    %c0_i32 = arith.constant 0 : i32
    %c0_i32_0 = arith.constant 0 : i32
    return %arg0, %c0_i32 : i32, i32
  }
  func.func @transform_1(%arg0: i32) -> (i32, i32) {
    %c0_i32 = arith.constant 0 : i32
    %c0_i32_0 = arith.constant 0 : i32
    return %arg0, %c0_i32 : i32, i32
  }
  func.func @transform_2(%arg0: i32) -> (i32, i32) {
    %c0_i32 = arith.constant 0 : i32
    %c0_i32_0 = arith.constant 0 : i32
    %c0_i32_1 = arith.constant 0 : i32
    return %c0_i32, %c0_i32_0 : i32, i32
  }
  func.func @transform_3(%arg0: i32) -> (i32, i32) {
    %c0_i32 = arith.constant 0 : i32
    %c0_i32_0 = arith.constant 0 : i32
    %c0_i32_1 = arith.constant 0 : i32
    return %c0_i32, %c0_i32_0 : i32, i32
  }
  func.func @transform_4(%arg0: i32) -> (i32, i32) {
    %c0_i32 = arith.constant 0 : i32
    %c0_i32_0 = arith.constant 0 : i32
    %c0_i32_1 = arith.constant 0 : i32
    return %c0_i32, %c0_i32_0 : i32, i32
  }
  func.func @transform_5(%arg0: i32) -> (i32, i32) {
    %c0_i32 = arith.constant 0 : i32
    %c0_i32_0 = arith.constant 0 : i32
    %c0_i32_1 = arith.constant 0 : i32
    return %c0_i32, %c0_i32_0 : i32, i32
  }
  func.func @transform_6(%arg0: i32) -> (i32, i32) {
    %c0_i32 = arith.constant 0 : i32
    %c0_i32_0 = arith.constant 0 : i32
    %c0_i32_1 = arith.constant 0 : i32
    return %c0_i32, %c0_i32_0 : i32, i32
  }
  func.func @transform_7(%arg0: i32) -> (i32, i32) {
    %c0_i32 = arith.constant 0 : i32
    %c0_i32_0 = arith.constant 0 : i32
    return %arg0, %c0_i32 : i32, i32
  }
}

</mosaic_0001>

<bundles_post_ra>
// kernel: tpu_custom_call.1
= control target key start
LH: loop header
LB: loop body
LE: loop exit
PB: predicated region body
PF: predicated region fallthrough
CT: control target
= control target key end

     0   :  { %12 = vsyncpa [#allocation3], 0  ;;  %s4824_s0 = inlined_call_operand.hbm [shape: bf16[8,768], index: 0, kind: input, shape index: {}]   ;;  %s4825_s1 = inlined_call_operand.hbm [shape: bf16[8,768], index: 1, kind: input, shape index: {}]   ;;  %s4826_s2 = inlined_call_operand.hbm [shape: bf16[768,512], index: 2, kind: input, shape index: {}]   ;;  %s4827_s3 = inlined_call_operand.hbm [shape: bf16[768,512], index: 3, kind: input, shape index: {}]   ;;  %s4828_s4 = inlined_call_operand.vmem [shape: f32[1,512], index: 4, kind: input, shape index: {}]   ;;  %s4829_s5 = inlined_call_operand.hbm [shape: bf16[512,128], index: 5, kind: input, shape index: {}]   ;;  %s4830_s6 = inlined_call_operand.vmem [shape: f32[1,128], index: 6, kind: input, shape index: {}]   ;;  %s4831_s7 = inlined_call_operand.hbm [shape: f32[8,128], index: 7, kind: output, shape index: {}]  }
   0x1   :  { %13 = vsyncpa [#allocation6], 0 }
   0x2   :  { %14 = vsyncpa [#allocation9], 0 }
   0x3   :  { %15 = vsyncpa [#allocation4], 0  ;;  %s4592_s24 = smov [#allocation5]   ;;  %s4452_s28 = scalar_lea.hbm %s4825_s1, 384 }
   0x4   :  { %s32_s25 = sshll.u32 %s4592_s24, 4  ;;  %p4453_p0 = scmp.ne.s32.totalorder %s4825_s1, %s4452_s28  ;;  %s33_s25 = int_to_ptr.vmem [resolvable:$true] %s32_s25 }
   0x5   :  { %p4456_p1 = scmp.lt.u32.totalorder %s4452_s28, %s4825_s1 }
   0x7   :  { %p4458_p2 = pnand %p4456_p1, %p4453_p0 }
   0x9   :  { %4461 = shalt.err (!%p4458_p2)
}
   0xa   :  { %s4462_s10 = scalar_lea.vmem %s33_s25, 384  ;;  %p4467_p4 = scmp.lt.s32.totalorder %s33_s25, %s33_s25 }
   0xb   :  { %p4463_p3 = scmp.ne.s32.totalorder %s33_s25, %s4462_s10  ;;  %p4468_p5 = scmp.lt.s32.totalorder %s4462_s10, %s4462_s10 }
   0xd   :  { %p4469_p6 = por %p4468_p5, %p4467_p4 }
   0xf   :  { %p4470_p7 = pnand %p4469_p6, %p4463_p3 }
  0x11   :  { %4473 = shalt.err (!%p4470_p7)
}
  0x12   :  { %35 = dma.hbm_to_vmem [thread:$0]  %s4825_s1, 384, %s33_s25, [#allocation6]  }
  0x13   :  { %s4593_s13 = smov [#allocation8]   ;;  %s4594_s15 = smov [#allocation2]  }
  0x14   :  { %s53_s14 = sshll.u32 %s4593_s13, 4  ;;  %s22_s16 = sshll.u32 %s4594_s15, 4  ;;  %s54_s14 = int_to_ptr.vmem [resolvable:$true] %s53_s14  ;;  %s23_s16 = int_to_ptr.vmem [resolvable:$true] %s22_s16 }
  0x15   :  { %s4474_s19 = scalar_lea.hbm %s4827_s3, 24576 }
  0x16   :  { %p4475_p8 = scmp.ne.s32.totalorder %s4827_s3, %s4474_s19  ;;  %p4478_p9 = scmp.lt.u32.totalorder %s4474_s19, %s4827_s3 }
  0x18   :  { %p4480_p10 = pnand %p4478_p9, %p4475_p8 }
  0x1a   :  { %4483 = shalt.err (!%p4480_p10)
}
  0x1b   :  { %s4484_s1 = scalar_lea.vmem %s54_s14, 24576  ;;  %p4489_p12 = scmp.lt.s32.totalorder %s54_s14, %s54_s14 }
  0x1c   :  { %p4485_p11 = scmp.ne.s32.totalorder %s54_s14, %s4484_s1  ;;  %p4490_p13 = scmp.lt.s32.totalorder %s4484_s1, %s4484_s1 }
  0x1e   :  { %p4491_p0 = por %p4490_p13, %p4489_p12 }
  0x20   :  { %p4492_p1 = pnand %p4491_p0, %p4485_p11 }
  0x22   :  { %4495 = shalt.err (!%p4492_p1)
}
  0x23   :  { %s4595_s24 = smov 256   ;;  %s4596_s25 = smov 16  }
  0x24   :  { %59 = dma.hbm_to_vmem [thread:$0]  %s4827_s3, 24576, %s54_s14, [#allocation9], %s4595_s24, %s4595_s24, %s4596_s25  }
  0x25   :  { %s4496_s30 = scalar_lea.hbm %s4824_s0, 384 }
  0x26   :  { %p4497_p2 = scmp.ne.s32.totalorder %s4824_s0, %s4496_s30  ;;  %p4500_p3 = scmp.lt.u32.totalorder %s4496_s30, %s4824_s0 }
  0x28   :  { %p4502_p4 = pnand %p4500_p3, %p4497_p2 }
  0x2a   :  { %4505 = shalt.err (!%p4502_p4)
}
  0x2b   :  { %s4506_s12 = scalar_lea.vmem %s23_s16, 384  ;;  %p4511_p6 = scmp.lt.s32.totalorder %s23_s16, %s23_s16 }
  0x2c   :  { %p4507_p5 = scmp.ne.s32.totalorder %s23_s16, %s4506_s12  ;;  %p4512_p7 = scmp.lt.s32.totalorder %s4506_s12, %s4506_s12 }
  0x2e   :  { %p4513_p8 = por %p4512_p7, %p4511_p6 }
  0x30   :  { %p4514_p9 = pnand %p4513_p8, %p4507_p5 }
  0x32   :  { %4517 = shalt.err (!%p4514_p9)
}
  0x33   :  { %25 = dma.hbm_to_vmem [thread:$0]  %s4824_s0, 384, %s23_s16, [#allocation3]  }
  0x34   :  { %s4597_s14 = smov [#allocation7]   ;;  %s4598_s17 = smov [#allocation10]  }
  0x35   :  { %s41_s15 = sshll.u32 %s4597_s14, 4  ;;  %s67_s18 = sshll.u32 %s4598_s17, 4  ;;  %s42_s15 = int_to_ptr.vmem [resolvable:$true] %s41_s15  ;;  %s68_s18 = int_to_ptr.vmem [resolvable:$true] %s67_s18 }
  0x36   :  { %s4518_s21 = scalar_lea.hbm %s4826_s2, 24576 }
  0x37   :  { %p4519_p10 = scmp.ne.s32.totalorder %s4826_s2, %s4518_s21  ;;  %p4522_p11 = scmp.lt.u32.totalorder %s4518_s21, %s4826_s2 }
  0x39   :  { %p4524_p12 = pnand %p4522_p11, %p4519_p10 }
  0x3b   :  { %4527 = shalt.err (!%p4524_p12)
}
  0x3c   :  { %s4528_s0 = scalar_lea.vmem %s42_s15, 24576  ;;  %p4533_p0 = scmp.lt.s32.totalorder %s42_s15, %s42_s15 }
  0x3d   :  { %p4529_p13 = scmp.ne.s32.totalorder %s42_s15, %s4528_s0  ;;  %p4534_p1 = scmp.lt.s32.totalorder %s4528_s0, %s4528_s0 }
  0x3f   :  { %p4535_p2 = por %p4534_p1, %p4533_p0 }
  0x41   :  { %p4536_p3 = pnand %p4535_p2, %p4529_p13 }
  0x43   :  { %4539 = shalt.err (!%p4536_p3)
}
  0x44   :  { %47 = dma.hbm_to_vmem [thread:$0]  %s4826_s2, 24576, %s42_s15, [#allocation6], %s4595_s24, %s4595_s24, %s4596_s25  }
  0x45   :  { %s4540_s30 = scalar_lea.hbm %s4829_s5, 4096 }
  0x46   :  { %p4541_p4 = scmp.ne.s32.totalorder %s4829_s5, %s4540_s30  ;;  %p4544_p5 = scmp.lt.u32.totalorder %s4540_s30, %s4829_s5 }
  0x48   :  { %p4546_p6 = pnand %p4544_p5, %p4541_p4 }
  0x4a   :  { %4549 = shalt.err (!%p4546_p6)
}
  0x4b   :  { %s4550_s12 = scalar_lea.vmem %s68_s18, 4096  ;;  %p4555_p8 = scmp.lt.s32.totalorder %s68_s18, %s68_s18 }
  0x4c   :  { %p4551_p7 = scmp.ne.s32.totalorder %s68_s18, %s4550_s12  ;;  %p4556_p9 = scmp.lt.s32.totalorder %s4550_s12, %s4550_s12 }
  0x4e   :  { %p4557_p10 = por %p4556_p9, %p4555_p8 }
  0x50   :  { %p4558_p11 = pnand %p4557_p10, %p4551_p7 }
  0x52   :  { %4561 = shalt.err (!%p4558_p11)
}
  0x53   :  { %s4599_s2 = smov 64   ;;  %s4600_s24 = smov 4  }
  0x54   :  { %73 = dma.hbm_to_vmem [thread:$0]  %s4829_s5, 4096, %s68_s18, [#allocation9], %s4599_s2, %s4599_s2, %s4600_s24  }
  0x55   :  { %4584 = dma.done.wait [#allocation3], 384  }
  0x56   :  { %4585 = vsyncadd [#allocation3], 4294966912 }
  0x57   :  { %4586 = dma.done.wait [#allocation6], 24960  }
  0x58   :  { %4587 = vsyncadd [#allocation6], 4294942336 }
  0x59   :  { %4588 = dma.done.wait [#allocation9], 28672  }
  0x5a   :  { %4589 = vsyncadd [#allocation9], 4294938624  ;;  %v3828_v0 = vld [vmem:[#allocation8 + $0x4] ss:$16 sps:$4 sm:$0xff]   ;;  %v3832_v2 = vld [vmem:[#allocation8] ss:$16 sps:$4 sm:$0xff]  }
  0x5b   :  { %v3830_v1 = vld [vmem:[#allocation8 + $0x204] ss:$16 sps:$4 sm:$0xff]   ;;  %1463 = vmatprep.subr.bf16.mxu0 %v3828_v0  ;;  %v3833_v3 = vld [vmem:[#allocation8 + $0x200] ss:$16 sps:$4 sm:$0xff]   ;;  %v287_v46 = vld [vmem:[#allocation5] sm:$0xff] }
  0x5c   :  { %1504 = vmatprep.subr.bf16.mxu1 %v3830_v1  ;;  %v3834_v4 = vld [vmem:[#allocation8 + $0x24] ss:$16 sps:$4 sm:$0xff]   ;;  %1464 = vmatpush1.bf16.msra.mxu0 %v3832_v2  ;;  %v3838_v6 = vld [vmem:[#allocation8 + $0x20] ss:$16 sps:$4 sm:$0xff]   ;;  %v4708_v47 = vcombine.high %v287_v46, %v287_v46 }
  0x5d   :  { %1505 = vmatpush1.bf16.msra.mxu1 %v3833_v3  ;;  %v3836_v5 = vld [vmem:[#allocation8 + $0x224] ss:$16 sps:$4 sm:$0xff]   ;;  %1465 = vmatprep.subr.bf16.mxu0 %v3834_v4  ;;  %v3839_v7 = vld [vmem:[#allocation8 + $0x220] ss:$16 sps:$4 sm:$0xff]  }
  0x5e   :  { %1506 = vmatprep.subr.bf16.mxu1 %v3836_v5  ;;  %v3840_v8 = vld [vmem:[#allocation8 + $0x44] ss:$16 sps:$4 sm:$0xff]   ;;  %v3844_v10 = vld [vmem:[#allocation8 + $0x40] ss:$16 sps:$4 sm:$0xff]   ;;  %1495 = vmatprep.mubr.bf16.mxu0 %v4708_v47  ;;  %v3933_v5 = vld [vmem:[#allocation8 + $0xc] ss:$16 sps:$4 sm:$0xff]  }
  0x5f   :  { %v3842_v9 = vld [vmem:[#allocation8 + $0x244] ss:$16 sps:$4 sm:$0xff]   ;;  %v3845_v11 = vld [vmem:[#allocation8 + $0x240] ss:$16 sps:$4 sm:$0xff]  }
  0x60   :  { %1466 = vmatpush1.bf16.msra.mxu0 %v3838_v6  ;;  %v3846_v12 = vld [vmem:[#allocation8 + $0x64] ss:$16 sps:$4 sm:$0xff]   ;;  %v3850_v14 = vld [vmem:[#allocation8 + $0x60] ss:$16 sps:$4 sm:$0xff]   ;;  %v4714_v6 = vcombine.low %v287_v46, %v287_v46 }
  0x61   :  { %1507 = vmatpush1.bf16.msra.mxu1 %v3839_v7  ;;  %1467 = vmatprep.subr.bf16.mxu0 %v3840_v8  ;;  %v3848_v13 = vld [vmem:[#allocation8 + $0x264] ss:$16 sps:$4 sm:$0xff]   ;;  %v3851_v15 = vld [vmem:[#allocation8 + $0x260] ss:$16 sps:$4 sm:$0xff]  }
  0x62   :  { %1508 = vmatprep.subr.bf16.mxu1 %v3842_v9  ;;  %v3852_v16 = vld [vmem:[#allocation8 + $0x84] ss:$16 sps:$4 sm:$0xff]   ;;  %v3856_v18 = vld [vmem:[#allocation8 + $0x80] ss:$16 sps:$4 sm:$0xff]   ;;  %v3931_v9 = vld [vmem:[#allocation8 + $0x8] ss:$16 sps:$4 sm:$0xff]  }
  0x63   :  { %v3854_v17 = vld [vmem:[#allocation8 + $0x284] ss:$16 sps:$4 sm:$0xff]   ;;  %v3857_v19 = vld [vmem:[#allocation8 + $0x280] ss:$16 sps:$4 sm:$0xff]  }
  0x64   :  { %1468 = vmatpush1.bf16.msra.mxu0 %v3844_v10  ;;  %v3858_v20 = vld [vmem:[#allocation8 + $0xa4] ss:$16 sps:$4 sm:$0xff]   ;;  %v3862_v22 = vld [vmem:[#allocation8 + $0xa0] ss:$16 sps:$4 sm:$0xff]  }
  0x65   :  { %1509 = vmatpush1.bf16.msra.mxu1 %v3845_v11  ;;  %1469 = vmatprep.subr.bf16.mxu0 %v3846_v12  ;;  %v3860_v21 = vld [vmem:[#allocation8 + $0x2a4] ss:$16 sps:$4 sm:$0xff]   ;;  %v3863_v23 = vld [vmem:[#allocation8 + $0x2a0] ss:$16 sps:$4 sm:$0xff]   ;;  %v3939_v11 = vld [vmem:[#allocation8 + $0x2c] ss:$16 sps:$4 sm:$0xff]  }
  0x66   :  { %1510 = vmatprep.subr.bf16.mxu1 %v3848_v13  ;;  %v3864_v24 = vld [vmem:[#allocation8 + $0xc4] ss:$16 sps:$4 sm:$0xff]   ;;  %v3868_v26 = vld [vmem:[#allocation8 + $0xc0] ss:$16 sps:$4 sm:$0xff]   ;;  %v3937_v13 = vld [vmem:[#allocation8 + $0x28] ss:$16 sps:$4 sm:$0xff]  }
  0x67   :  { %v3866_v25 = vld [vmem:[#allocation8 + $0x2c4] ss:$16 sps:$4 sm:$0xff]   ;;  %v3869_v27 = vld [vmem:[#allocation8 + $0x2c0] ss:$16 sps:$4 sm:$0xff]  }
  0x68   :  { %1470 = vmatpush1.bf16.msra.mxu0 %v3850_v14  ;;  %v3870_v28 = vld [vmem:[#allocation8 + $0xe4] ss:$16 sps:$4 sm:$0xff]   ;;  %v3874_v30 = vld [vmem:[#allocation8 + $0xe0] ss:$16 sps:$4 sm:$0xff]  }
  0x69   :  { %1511 = vmatpush1.bf16.msra.mxu1 %v3851_v15  ;;  %1471 = vmatprep.subr.bf16.mxu0 %v3852_v16  ;;  %v3872_v29 = vld [vmem:[#allocation8 + $0x2e4] ss:$16 sps:$4 sm:$0xff]   ;;  %v3875_v31 = vld [vmem:[#allocation8 + $0x2e0] ss:$16 sps:$4 sm:$0xff]   ;;  %v3945_v15 = vld [vmem:[#allocation8 + $0x4c] ss:$16 sps:$4 sm:$0xff]  }
  0x6a   :  { %1512 = vmatprep.subr.bf16.mxu1 %v3854_v17  ;;  %v3876_v32 = vld [vmem:[#allocation8 + $0x104] ss:$16 sps:$4 sm:$0xff]   ;;  %v3880_v34 = vld [vmem:[#allocation8 + $0x100] ss:$16 sps:$4 sm:$0xff]   ;;  %v3943_v17 = vld [vmem:[#allocation8 + $0x48] ss:$16 sps:$4 sm:$0xff]  }
  0x6b   :  { %v3878_v33 = vld [vmem:[#allocation8 + $0x304] ss:$16 sps:$4 sm:$0xff]   ;;  %v3881_v35 = vld [vmem:[#allocation8 + $0x300] ss:$16 sps:$4 sm:$0xff]  }
  0x6c   :  { %1472 = vmatpush1.bf16.msra.mxu0 %v3856_v18  ;;  %v3882_v36 = vld [vmem:[#allocation8 + $0x124] ss:$16 sps:$4 sm:$0xff]   ;;  %v3886_v38 = vld [vmem:[#allocation8 + $0x120] ss:$16 sps:$4 sm:$0xff]  }
  0x6d   :  { %1513 = vmatpush1.bf16.msra.mxu1 %v3857_v19  ;;  %1473 = vmatprep.subr.bf16.mxu0 %v3858_v20  ;;  %v3884_v37 = vld [vmem:[#allocation8 + $0x324] ss:$16 sps:$4 sm:$0xff]   ;;  %v3887_v39 = vld [vmem:[#allocation8 + $0x320] ss:$16 sps:$4 sm:$0xff]   ;;  %v3951_v19 = vld [vmem:[#allocation8 + $0x6c] ss:$16 sps:$4 sm:$0xff]  }
  0x6e   :  { %1514 = vmatprep.subr.bf16.mxu1 %v3860_v21  ;;  %v3888_v40 = vld [vmem:[#allocation8 + $0x144] ss:$16 sps:$4 sm:$0xff]   ;;  %v3892_v42 = vld [vmem:[#allocation8 + $0x140] ss:$16 sps:$4 sm:$0xff]   ;;  %v3949_v21 = vld [vmem:[#allocation8 + $0x68] ss:$16 sps:$4 sm:$0xff]  }
  0x6f   :  { %v3890_v41 = vld [vmem:[#allocation8 + $0x344] ss:$16 sps:$4 sm:$0xff]   ;;  %v3893_v43 = vld [vmem:[#allocation8 + $0x340] ss:$16 sps:$4 sm:$0xff]  }
  0x70   :  { %1474 = vmatpush1.bf16.msra.mxu0 %v3862_v22  ;;  %v3894_v44 = vld [vmem:[#allocation8 + $0x164] ss:$16 sps:$4 sm:$0xff]   ;;  %v3898_v49 = vld [vmem:[#allocation8 + $0x160] ss:$16 sps:$4 sm:$0xff]  }
  0x71   :  { %1515 = vmatpush1.bf16.msra.mxu1 %v3863_v23  ;;  %1475 = vmatprep.subr.bf16.mxu0 %v3864_v24  ;;  %v3896_v45 = vld [vmem:[#allocation8 + $0x364] ss:$16 sps:$4 sm:$0xff]   ;;  %v3899_v50 = vld [vmem:[#allocation8 + $0x360] ss:$16 sps:$4 sm:$0xff]   ;;  %v3957_v23 = vld [vmem:[#allocation8 + $0x8c] ss:$16 sps:$4 sm:$0xff]  }
  0x72   :  { %1516 = vmatprep.subr.bf16.mxu1 %v3866_v25  ;;  %v288_v48 = vld [vmem:[#allocation5 + $0x8] sm:$0xff]  ;;  %v3955_v25 = vld [vmem:[#allocation8 + $0x88] ss:$16 sps:$4 sm:$0xff]  }
  0x73   :  { %v4710_v51 = vcombine.high %v288_v48, %v288_v48  ;;  %v3900_v52 = vld [vmem:[#allocation8 + $0x184] ss:$16 sps:$4 sm:$0xff]   ;;  %v3904_v54 = vld [vmem:[#allocation8 + $0x180] ss:$16 sps:$4 sm:$0xff]   ;;  %v4716_v7 = vcombine.low %v288_v48, %v288_v48 }
  0x74   :  { %1476 = vmatpush1.bf16.msra.mxu0 %v3868_v26  ;;  %v3902_v53 = vld [vmem:[#allocation8 + $0x384] ss:$16 sps:$4 sm:$0xff]   ;;  %v3905_v55 = vld [vmem:[#allocation8 + $0x380] ss:$16 sps:$4 sm:$0xff]  }
  0x75   :  { %1517 = vmatpush1.bf16.msra.mxu1 %v3869_v27  ;;  %1477 = vmatprep.subr.bf16.mxu0 %v3870_v28  ;;  %v3906_v56 = vld [vmem:[#allocation8 + $0x1a4] ss:$16 sps:$4 sm:$0xff]   ;;  %v3910_v58 = vld [vmem:[#allocation8 + $0x1a0] ss:$16 sps:$4 sm:$0xff]   ;;  %v3963_v27 = vld [vmem:[#allocation8 + $0xac] ss:$16 sps:$4 sm:$0xff]  }
  0x76   :  { %1518 = vmatprep.subr.bf16.mxu1 %v3872_v29  ;;  %1536 = vmatprep.mubr.bf16.mxu1 %v4710_v51  ;;  %v3908_v57 = vld [vmem:[#allocation8 + $0x3a4] ss:$16 sps:$4 sm:$0xff]   ;;  %v3911_v59 = vld [vmem:[#allocation8 + $0x3a0] ss:$16 sps:$4 sm:$0xff]   ;;  %v3961_v29 = vld [vmem:[#allocation8 + $0xa8] ss:$16 sps:$4 sm:$0xff]  }
  0x77   :  { %v3912_v60 = vld [vmem:[#allocation8 + $0x1c4] ss:$16 sps:$4 sm:$0xff]   ;;  %v3916_v62 = vld [vmem:[#allocation8 + $0x1c0] ss:$16 sps:$4 sm:$0xff]  }
  0x78   :  { %1478 = vmatpush1.bf16.msra.mxu0 %v3874_v30  ;;  %v3914_v61 = vld [vmem:[#allocation8 + $0x3c4] ss:$16 sps:$4 sm:$0xff]   ;;  %v3917_v63 = vld [vmem:[#allocation8 + $0x3c0] ss:$16 sps:$4 sm:$0xff]  }
  0x79   :  { %1519 = vmatpush1.bf16.msra.mxu1 %v3875_v31  ;;  %1479 = vmatprep.subr.bf16.mxu0 %v3876_v32  ;;  %v3918_v0 = vld [vmem:[#allocation8 + $0x1e4] ss:$16 sps:$4 sm:$0xff]   ;;  %v3922_v2 = vld [vmem:[#allocation8 + $0x1e0] ss:$16 sps:$4 sm:$0xff]   ;;  %v3969_v31 = vld [vmem:[#allocation8 + $0xcc] ss:$16 sps:$4 sm:$0xff]  }
  0x7a   :  { %1520 = vmatprep.subr.bf16.mxu1 %v3878_v33  ;;  %v3920_v1 = vld [vmem:[#allocation8 + $0x3e4] ss:$16 sps:$4 sm:$0xff]   ;;  %v3923_v3 = vld [vmem:[#allocation8 + $0x3e0] ss:$16 sps:$4 sm:$0xff]   ;;  %v4721_v32 = vld [vmem:[#allocation5 + $0x10] sm:$0xff] }
  0x7b   :  { %v3930_v4 = vld [vmem:[#allocation8 + $0x404] ss:$16 sps:$4 sm:$0xff]   ;;  %v3928_v8 = vld [vmem:[#allocation8 + $0x400] ss:$16 sps:$4 sm:$0xff]  }
  0x7c   :  { %1480 = vmatpush1.bf16.msra.mxu0 %v3880_v34  ;;  %v3936_v10 = vld [vmem:[#allocation8 + $0x424] ss:$16 sps:$4 sm:$0xff]   ;;  %v3934_v12 = vld [vmem:[#allocation8 + $0x420] ss:$16 sps:$4 sm:$0xff]   ;;  %v4725_v34 = vcombine.high %v4721_v32, %v4721_v32 }
  0x7d   :  { %1521 = vmatpush1.bf16.msra.mxu1 %v3881_v35  ;;  %1481 = vmatprep.subr.bf16.mxu0 %v3882_v36  ;;  %v3942_v14 = vld [vmem:[#allocation8 + $0x444] ss:$16 sps:$4 sm:$0xff]   ;;  %v3940_v16 = vld [vmem:[#allocation8 + $0x440] ss:$16 sps:$4 sm:$0xff]   ;;  %v3967_v35 = vld [vmem:[#allocation8 + $0xc8] ss:$16 sps:$4 sm:$0xff]  }
  0x7e   :  { %1522 = vmatprep.subr.bf16.mxu1 %v3884_v37  ;;  %v3948_v18 = vld [vmem:[#allocation8 + $0x464] ss:$16 sps:$4 sm:$0xff]   ;;  %v3946_v20 = vld [vmem:[#allocation8 + $0x460] ss:$16 sps:$4 sm:$0xff]   ;;  %v3975_v37 = vld [vmem:[#allocation8 + $0xec] ss:$16 sps:$4 sm:$0xff]  }
  0x7f   :  { %v3954_v22 = vld [vmem:[#allocation8 + $0x484] ss:$16 sps:$4 sm:$0xff]   ;;  %v3952_v24 = vld [vmem:[#allocation8 + $0x480] ss:$16 sps:$4 sm:$0xff]  }
  0x80   :  { %1482 = vmatpush1.bf16.msra.mxu0 %v3886_v38  ;;  %v3960_v26 = vld [vmem:[#allocation8 + $0x4a4] ss:$16 sps:$4 sm:$0xff]   ;;  %v3958_v28 = vld [vmem:[#allocation8 + $0x4a0] ss:$16 sps:$4 sm:$0xff]  }
  0x81   :  { %1523 = vmatpush1.bf16.msra.mxu1 %v3887_v39  ;;  %1483 = vmatprep.subr.bf16.mxu0 %v3888_v40  ;;  %v3966_v30 = vld [vmem:[#allocation8 + $0x4c4] ss:$16 sps:$4 sm:$0xff]   ;;  %v3964_v33 = vld [vmem:[#allocation8 + $0x4c0] ss:$16 sps:$4 sm:$0xff]   ;;  %v3973_v39 = vld [vmem:[#allocation8 + $0xe8] ss:$16 sps:$4 sm:$0xff]  }
  0x82   :  { %1524 = vmatprep.subr.bf16.mxu1 %v3890_v41  ;;  %v3972_v36 = vld [vmem:[#allocation8 + $0x4e4] ss:$16 sps:$4 sm:$0xff]   ;;  %v3970_v38 = vld [vmem:[#allocation8 + $0x4e0] ss:$16 sps:$4 sm:$0xff]   ;;  %v3981_v41 = vld [vmem:[#allocation8 + $0x10c] ss:$16 sps:$4 sm:$0xff]  }
  0x83   :  { %v3978_v40 = vld [vmem:[#allocation8 + $0x504] ss:$16 sps:$4 sm:$0xff]   ;;  %v3982_v46 = vld [vmem:[#allocation8 + $0x520] ss:$16 sps:$4 sm:$0xff]  }
  0x84   :  { %1484 = vmatpush1.bf16.msra.mxu0 %v3892_v42  ;;  %v3976_v42 = vld [vmem:[#allocation8 + $0x500] ss:$16 sps:$4 sm:$0xff]   ;;  %v3990_v48 = vld [vmem:[#allocation8 + $0x544] ss:$16 sps:$4 sm:$0xff]  }
  0x85   :  { %1525 = vmatpush1.bf16.msra.mxu1 %v3893_v43  ;;  %1485 = vmatprep.subr.bf16.mxu0 %v3894_v44  ;;  %v3979_v43 = vld [vmem:[#allocation8 + $0x108] ss:$16 sps:$4 sm:$0xff]   ;;  %v3984_v44 = vld [vmem:[#allocation8 + $0x524] ss:$16 sps:$4 sm:$0xff]  }
  0x86   :  { %1526 = vmatprep.subr.bf16.mxu1 %v3896_v45  ;;  %v3987_v45 = vld [vmem:[#allocation8 + $0x12c] ss:$16 sps:$4 sm:$0xff]  }
  0x88   :  { %1486 = vmatpush1.bf16.msra.mxu0 %v3898_v49  ;;  %v3993_v49 = vld [vmem:[#allocation8 + $0x14c] ss:$16 sps:$4 sm:$0xff]  }
  0x89   :  { %1527 = vmatpush1.bf16.msra.mxu1 %v3899_v50  ;;  %1487 = vmatprep.subr.bf16.mxu0 %v3900_v52  ;;  %v3988_v50 = vld [vmem:[#allocation8 + $0x540] ss:$16 sps:$4 sm:$0xff]   ;;  %v3991_v52 = vld [vmem:[#allocation8 + $0x148] ss:$16 sps:$4 sm:$0xff]  }
  0x8a   :  { %1528 = vmatprep.subr.bf16.mxu1 %v3902_v53  ;;  %v3996_v53 = vld [vmem:[#allocation8 + $0x564] ss:$16 sps:$4 sm:$0xff]  }
  0x8c   :  { %1488 = vmatpush1.bf16.msra.mxu0 %v3904_v54  ;;  %v3999_v54 = vld [vmem:[#allocation8 + $0x16c] ss:$16 sps:$4 sm:$0xff]  }
  0x8d   :  { %1529 = vmatpush1.bf16.msra.mxu1 %v3905_v55  ;;  %1489 = vmatprep.subr.bf16.mxu0 %v3906_v56  ;;  %v3994_v55 = vld [vmem:[#allocation8 + $0x560] ss:$16 sps:$4 sm:$0xff]   ;;  %v3997_v56 = vld [vmem:[#allocation8 + $0x168] ss:$16 sps:$4 sm:$0xff]  }
  0x8e   :  { %1530 = vmatprep.subr.bf16.mxu1 %v3908_v57  ;;  %v4002_v57 = vld [vmem:[#allocation8 + $0x584] ss:$16 sps:$4 sm:$0xff]  }
  0x90   :  { %1490 = vmatpush1.bf16.msra.mxu0 %v3910_v58  ;;  %v4005_v58 = vld [vmem:[#allocation8 + $0x18c] ss:$16 sps:$4 sm:$0xff]  }
  0x91   :  { %1531 = vmatpush1.bf16.msra.mxu1 %v3911_v59  ;;  %1491 = vmatprep.subr.bf16.mxu0 %v3912_v60  ;;  %v4000_v59 = vld [vmem:[#allocation8 + $0x580] ss:$16 sps:$4 sm:$0xff]   ;;  %v4003_v60 = vld [vmem:[#allocation8 + $0x188] ss:$16 sps:$4 sm:$0xff]  }
  0x92   :  { %1532 = vmatprep.subr.bf16.mxu1 %v3914_v61  ;;  %v4008_v61 = vld [vmem:[#allocation8 + $0x5a4] ss:$16 sps:$4 sm:$0xff]  }
  0x94   :  { %1492 = vmatpush1.bf16.msra.mxu0 %v3916_v62  ;;  %v4011_v62 = vld [vmem:[#allocation8 + $0x1ac] ss:$16 sps:$4 sm:$0xff]  }
  0x95   :  { %1533 = vmatpush1.bf16.msra.mxu1 %v3917_v63  ;;  %1493 = vmatprep.subr.bf16.mxu0 %v3918_v0  ;;  %v4006_v63 = vld [vmem:[#allocation8 + $0x5a0] ss:$16 sps:$4 sm:$0xff]   ;;  %v4009_v0 = vld [vmem:[#allocation8 + $0x1a8] ss:$16 sps:$4 sm:$0xff]  }
  0x96   :  { %1534 = vmatprep.subr.bf16.mxu1 %v3920_v1  ;;  %v4014_v1 = vld [vmem:[#allocation8 + $0x5c4] ss:$16 sps:$4 sm:$0xff]  }
  0x98   :  { %1494 = vmatpush1.bf16.msra.mxu0 %v3922_v2  ;;  %v4017_v2 = vld [vmem:[#allocation8 + $0x1cc] ss:$16 sps:$4 sm:$0xff]  }
  0x99   :  { %1535 = vmatpush1.bf16.msra.mxu1 %v3923_v3  ;;  %1545 = vmatprep.subr.bf16.mxu0 %v3930_v4  ;;  %v4012_v3 = vld [vmem:[#allocation8 + $0x5c0] ss:$16 sps:$4 sm:$0xff]   ;;  %v4015_v4 = vld [vmem:[#allocation8 + $0x1c8] ss:$16 sps:$4 sm:$0xff]  }
  0x9a   :  { %1586 = vmatprep.subr.bf16.mxu1 %v3933_v5  ;;  %v4020_v5 = vld [vmem:[#allocation8 + $0x5e4] ss:$16 sps:$4 sm:$0xff]  }
  0x9b   :  { %1496 = vmatmul.mubr.bf16.vlgmr.msra.gmra.mrb[0].mxu0 %v4714_v6 }
  0x9c   :  { %1537 = vmatmul.mubr.bf16.vlgmr.msra.gmra.mrb[0].mxu1 %v4716_v7  ;;  %1546 = vmatpush1.bf16.msra.mxu0 %v3928_v8  ;;  %v4023_v8 = vld [vmem:[#allocation8 + $0x1ec] ss:$16 sps:$4 sm:$0xff]  }
  0x9d   :  { %1587 = vmatpush1.bf16.msra.mxu1 %v3931_v9  ;;  %1547 = vmatprep.subr.bf16.mxu0 %v3936_v10  ;;  %v4018_v9 = vld [vmem:[#allocation8 + $0x5e0] ss:$16 sps:$4 sm:$0xff]   ;;  %v4021_v10 = vld [vmem:[#allocation8 + $0x1e8] ss:$16 sps:$4 sm:$0xff]  }
  0x9e   :  { %1588 = vmatprep.subr.bf16.mxu1 %v3939_v11  ;;  %1618 = vmatprep.mubr.bf16.mxu1 %v4708_v47  ;;  %v3985_v47 = vld [vmem:[#allocation8 + $0x128] ss:$16 sps:$4 sm:$0xff]   ;;  %v4028_v11 = vld [vmem:[#allocation8 + $0x20c] ss:$16 sps:$4 sm:$0xff]  }
  0x9f   :  { %1577 = vmatprep.mubr.bf16.mxu0 %v4725_v34 }
  0xa0   :  { %1548 = vmatpush1.bf16.msra.mxu0 %v3934_v12  ;;  %v4031_v12 = vld [vmem:[#allocation8 + $0x40c] ss:$16 sps:$4 sm:$0xff]  }
  0xa1   :  { %1589 = vmatpush1.bf16.msra.mxu1 %v3937_v13  ;;  %1549 = vmatprep.subr.bf16.mxu0 %v3942_v14  ;;  %v4730_v13 = vcombine.low %v4721_v32, %v4721_v32  ;;  %v4026_v14 = vld [vmem:[#allocation8 + $0x208] ss:$16 sps:$4 sm:$0xff]  }
  0xa2   :  { %1590 = vmatprep.subr.bf16.mxu1 %v3945_v15  ;;  %v4029_v15 = vld [vmem:[#allocation8 + $0x408] ss:$16 sps:$4 sm:$0xff]  }
  0xa3   :  { %v4056_v32 = vld [vmem:[#allocation8 + $0x2a8] ss:$16 sps:$4 sm:$0xff]  }
  0xa4   :  { %1550 = vmatpush1.bf16.msra.mxu0 %v3940_v16  ;;  %v4034_v16 = vld [vmem:[#allocation8 + $0x22c] ss:$16 sps:$4 sm:$0xff]  }
  0xa5   :  { %1591 = vmatpush1.bf16.msra.mxu1 %v3943_v17  ;;  %1551 = vmatprep.subr.bf16.mxu0 %v3948_v18  ;;  %v4037_v17 = vld [vmem:[#allocation8 + $0x42c] ss:$16 sps:$4 sm:$0xff]   ;;  %v4032_v18 = vld [vmem:[#allocation8 + $0x228] ss:$16 sps:$4 sm:$0xff]  }
  0xa6   :  { %1592 = vmatprep.subr.bf16.mxu1 %v3951_v19  ;;  %v4035_v19 = vld [vmem:[#allocation8 + $0x428] ss:$16 sps:$4 sm:$0xff]  }
  0xa8   :  { %1552 = vmatpush1.bf16.msra.mxu0 %v3946_v20  ;;  %v4040_v20 = vld [vmem:[#allocation8 + $0x24c] ss:$16 sps:$4 sm:$0xff]  }
  0xa9   :  { %1593 = vmatpush1.bf16.msra.mxu1 %v3949_v21  ;;  %1553 = vmatprep.subr.bf16.mxu0 %v3954_v22  ;;  %v4043_v21 = vld [vmem:[#allocation8 + $0x44c] ss:$16 sps:$4 sm:$0xff]   ;;  %v4038_v22 = vld [vmem:[#allocation8 + $0x248] ss:$16 sps:$4 sm:$0xff]  }
  0xaa   :  { %1594 = vmatprep.subr.bf16.mxu1 %v3957_v23  ;;  %v4041_v23 = vld [vmem:[#allocation8 + $0x448] ss:$16 sps:$4 sm:$0xff]  }
  0xac   :  { %1554 = vmatpush1.bf16.msra.mxu0 %v3952_v24  ;;  %v4046_v24 = vld [vmem:[#allocation8 + $0x26c] ss:$16 sps:$4 sm:$0xff]  }
  0xad   :  { %1595 = vmatpush1.bf16.msra.mxu1 %v3955_v25  ;;  %1555 = vmatprep.subr.bf16.mxu0 %v3960_v26  ;;  %v4044_v25 = vld [vmem:[#allocation8 + $0x268] ss:$16 sps:$4 sm:$0xff]  }
  0xae   :  { %1596 = vmatprep.subr.bf16.mxu1 %v3963_v27  ;;  %v4047_v26 = vld [vmem:[#allocation8 + $0x468] ss:$16 sps:$4 sm:$0xff]   ;;  %v4052_v27 = vld [vmem:[#allocation8 + $0x28c] ss:$16 sps:$4 sm:$0xff]  }
  0xb0   :  { %1556 = vmatpush1.bf16.msra.mxu0 %v3958_v28  ;;  %v4055_v28 = vld [vmem:[#allocation8 + $0x48c] ss:$16 sps:$4 sm:$0xff]  }
  0xb1   :  { %1597 = vmatpush1.bf16.msra.mxu1 %v3961_v29  ;;  %1557 = vmatprep.subr.bf16.mxu0 %v3966_v30  ;;  %v4050_v29 = vld [vmem:[#allocation8 + $0x288] ss:$16 sps:$4 sm:$0xff]   ;;  %v4058_v30 = vld [vmem:[#allocation8 + $0x2ac] ss:$16 sps:$4 sm:$0xff]  }
  0xb2   :  { %1598 = vmatprep.subr.bf16.mxu1 %v3969_v31  ;;  %v4061_v31 = vld [vmem:[#allocation8 + $0x4ac] ss:$16 sps:$4 sm:$0xff]  }
  0xb4   :  { %1558 = vmatpush1.bf16.msra.mxu0 %v3964_v33  ;;  %v4059_v33 = vld [vmem:[#allocation8 + $0x4a8] ss:$16 sps:$4 sm:$0xff]  }
  0xb5   :  { %1599 = vmatpush1.bf16.msra.mxu1 %v3967_v35  ;;  %1559 = vmatprep.subr.bf16.mxu0 %v3972_v36  ;;  %v4067_v35 = vld [vmem:[#allocation8 + $0x4cc] ss:$16 sps:$4 sm:$0xff]   ;;  %v4062_v36 = vld [vmem:[#allocation8 + $0x2c8] ss:$16 sps:$4 sm:$0xff]  }
  0xb6   :  { %1600 = vmatprep.subr.bf16.mxu1 %v3975_v37  ;;  %v4065_v37 = vld [vmem:[#allocation8 + $0x4c8] ss:$16 sps:$4 sm:$0xff]  }
  0xb8   :  { %1560 = vmatpush1.bf16.msra.mxu0 %v3970_v38  ;;  %v4070_v38 = vld [vmem:[#allocation8 + $0x2ec] ss:$16 sps:$4 sm:$0xff]  }
  0xb9   :  { %1601 = vmatpush1.bf16.msra.mxu1 %v3973_v39  ;;  %1561 = vmatprep.subr.bf16.mxu0 %v3978_v40  ;;  %v4073_v39 = vld [vmem:[#allocation8 + $0x4ec] ss:$16 sps:$4 sm:$0xff]   ;;  %v4068_v40 = vld [vmem:[#allocation8 + $0x2e8] ss:$16 sps:$4 sm:$0xff]  }
  0xba   :  { %1602 = vmatprep.subr.bf16.mxu1 %v3981_v41  ;;  %v4071_v41 = vld [vmem:[#allocation8 + $0x4e8] ss:$16 sps:$4 sm:$0xff]  }
  0xbc   :  { %1562 = vmatpush1.bf16.msra.mxu0 %v3976_v42  ;;  %v4076_v42 = vld [vmem:[#allocation8 + $0x30c] ss:$16 sps:$4 sm:$0xff]  }
  0xbd   :  { %1603 = vmatpush1.bf16.msra.mxu1 %v3979_v43  ;;  %1563 = vmatprep.subr.bf16.mxu0 %v3984_v44  ;;  %v4079_v43 = vld [vmem:[#allocation8 + $0x50c] ss:$16 sps:$4 sm:$0xff]   ;;  %v4074_v44 = vld [vmem:[#allocation8 + $0x308] ss:$16 sps:$4 sm:$0xff]  }
  0xbe   :  { %1604 = vmatprep.subr.bf16.mxu1 %v3987_v45  ;;  %v4077_v45 = vld [vmem:[#allocation8 + $0x508] ss:$16 sps:$4 sm:$0xff]  }
  0xc0   :  { %1564 = vmatpush1.bf16.msra.mxu0 %v3982_v46  ;;  %v4082_v46 = vld [vmem:[#allocation8 + $0x32c] ss:$16 sps:$4 sm:$0xff]  }
  0xc1   :  { %1605 = vmatpush1.bf16.msra.mxu1 %v3985_v47  ;;  %1565 = vmatprep.subr.bf16.mxu0 %v3990_v48  ;;  %v4085_v47 = vld [vmem:[#allocation8 + $0x52c] ss:$16 sps:$4 sm:$0xff]   ;;  %v4080_v48 = vld [vmem:[#allocation8 + $0x328] ss:$16 sps:$4 sm:$0xff]  }
  0xc2   :  { %1606 = vmatprep.subr.bf16.mxu1 %v3993_v49  ;;  %v4083_v49 = vld [vmem:[#allocation8 + $0x528] ss:$16 sps:$4 sm:$0xff]  }
  0xc4   :  { %1566 = vmatpush1.bf16.msra.mxu0 %v3988_v50  ;;  %v4088_v50 = vld [vmem:[#allocation8 + $0x34c] ss:$16 sps:$4 sm:$0xff]  }
  0xc5   :  { %1607 = vmatpush1.bf16.msra.mxu1 %v3991_v52  ;;  %1567 = vmatprep.subr.bf16.mxu0 %v3996_v53  ;;  %v4091_v52 = vld [vmem:[#allocation8 + $0x54c] ss:$16 sps:$4 sm:$0xff]   ;;  %v4086_v53 = vld [vmem:[#allocation8 + $0x348] ss:$16 sps:$4 sm:$0xff]  }
  0xc6   :  { %1608 = vmatprep.subr.bf16.mxu1 %v3999_v54  ;;  %v4089_v54 = vld [vmem:[#allocation8 + $0x548] ss:$16 sps:$4 sm:$0xff]  }
  0xc8   :  { %1568 = vmatpush1.bf16.msra.mxu0 %v3994_v55  ;;  %v4094_v55 = vld [vmem:[#allocation8 + $0x36c] ss:$16 sps:$4 sm:$0xff]  }
  0xc9   :  { %1609 = vmatpush1.bf16.msra.mxu1 %v3997_v56  ;;  %1569 = vmatprep.subr.bf16.mxu0 %v4002_v57  ;;  %v4097_v56 = vld [vmem:[#allocation8 + $0x56c] ss:$16 sps:$4 sm:$0xff]   ;;  %v4092_v57 = vld [vmem:[#allocation8 + $0x368] ss:$16 sps:$4 sm:$0xff]  }
  0xca   :  { %1610 = vmatprep.subr.bf16.mxu1 %v4005_v58  ;;  %v4095_v58 = vld [vmem:[#allocation8 + $0x568] ss:$16 sps:$4 sm:$0xff]  }
  0xcc   :  { %1570 = vmatpush1.bf16.msra.mxu0 %v4000_v59  ;;  %v4100_v59 = vld [vmem:[#allocation8 + $0x38c] ss:$16 sps:$4 sm:$0xff]  }
  0xcd   :  { %1611 = vmatpush1.bf16.msra.mxu1 %v4003_v60  ;;  %1571 = vmatprep.subr.bf16.mxu0 %v4008_v61  ;;  %v4103_v60 = vld [vmem:[#allocation8 + $0x58c] ss:$16 sps:$4 sm:$0xff]   ;;  %v4098_v61 = vld [vmem:[#allocation8 + $0x388] ss:$16 sps:$4 sm:$0xff]  }
  0xce   :  { %1612 = vmatprep.subr.bf16.mxu1 %v4011_v62  ;;  %v4101_v62 = vld [vmem:[#allocation8 + $0x588] ss:$16 sps:$4 sm:$0xff]  }
  0xd0   :  { %1572 = vmatpush1.bf16.msra.mxu0 %v4006_v63  ;;  %v4106_v63 = vld [vmem:[#allocation8 + $0x3ac] ss:$16 sps:$4 sm:$0xff]  }
  0xd1   :  { %1613 = vmatpush1.bf16.msra.mxu1 %v4009_v0  ;;  %1573 = vmatprep.subr.bf16.mxu0 %v4014_v1  ;;  %v4109_v0 = vld [vmem:[#allocation8 + $0x5ac] ss:$16 sps:$4 sm:$0xff]   ;;  %v4104_v1 = vld [vmem:[#allocation8 + $0x3a8] ss:$16 sps:$4 sm:$0xff]  }
  0xd2   :  { %1614 = vmatprep.subr.bf16.mxu1 %v4017_v2  ;;  %v4107_v2 = vld [vmem:[#allocation8 + $0x5a8] ss:$16 sps:$4 sm:$0xff]  }
  0xd4   :  { %1574 = vmatpush1.bf16.msra.mxu0 %v4012_v3  ;;  %v4112_v3 = vld [vmem:[#allocation8 + $0x3cc] ss:$16 sps:$4 sm:$0xff]  }
  0xd5   :  { %1615 = vmatpush1.bf16.msra.mxu1 %v4015_v4  ;;  %1575 = vmatprep.subr.bf16.mxu0 %v4020_v5  ;;  %v4115_v4 = vld [vmem:[#allocation8 + $0x5cc] ss:$16 sps:$4 sm:$0xff]   ;;  %v4110_v5 = vld [vmem:[#allocation8 + $0x3c8] ss:$16 sps:$4 sm:$0xff]  }
  0xd6   :  { %1616 = vmatprep.subr.bf16.mxu1 %v4023_v8  ;;  %v4113_v8 = vld [vmem:[#allocation8 + $0x5c8] ss:$16 sps:$4 sm:$0xff]  }
  0xd8   :  { %1576 = vmatpush1.bf16.msra.mxu0 %v4018_v9  ;;  %v4118_v9 = vld [vmem:[#allocation8 + $0x3ec] ss:$16 sps:$4 sm:$0xff]  }
  0xd9   :  { %1617 = vmatpush1.bf16.msra.mxu1 %v4021_v10  ;;  %1627 = vmatprep.subr.bf16.mxu0 %v4028_v11  ;;  %v4121_v10 = vld [vmem:[#allocation8 + $0x5ec] ss:$16 sps:$4 sm:$0xff]   ;;  %v4116_v11 = vld [vmem:[#allocation8 + $0x3e8] ss:$16 sps:$4 sm:$0xff]  }
  0xda   :  { %1668 = vmatprep.subr.bf16.mxu1 %v4031_v12  ;;  %v4119_v12 = vld [vmem:[#allocation8 + $0x5e8] ss:$16 sps:$4 sm:$0xff]  }
  0xdb   :  { %1578 = vmatmul.mubr.bf16.vlgmr.msra.gmra.mrb[4].mxu0 %v4730_v13 }
  0xdc   :  { %1619 = vmatmul.mubr.bf16.vlgmr.msra.gmra.mrb[4].mxu1 %v4714_v6  ;;  %1628 = vmatpush1.bf16.msra.mxu0 %v4026_v14  ;;  %v4049_v6 = vld [vmem:[#allocation8 + $0x46c] ss:$16 sps:$4 sm:$0xff]   ;;  %v4124_v14 = vld [vmem:[#allocation7 + $0x4] ss:$16 sps:$4 sm:$0xff]  }
  0xdd   :  { %1669 = vmatpush1.bf16.msra.mxu1 %v4029_v15  ;;  %1629 = vmatprep.subr.bf16.mxu0 %v4034_v16  ;;  %v4127_v15 = vld [vmem:[#allocation7 + $0x204] ss:$16 sps:$4 sm:$0xff]   ;;  %v4122_v16 = vld [vmem:[#allocation7] ss:$16 sps:$4 sm:$0xff]  }
  0xde   :  { %1670 = vmatprep.subr.bf16.mxu1 %v4037_v17  ;;  %1659 = vmatprep.mubr.bf16.mxu0 %v4710_v51  ;;  %v4053_v51 = vld [vmem:[#allocation8 + $0x488] ss:$16 sps:$4 sm:$0xff]   ;;  %v4736_v17 = vld [vmem:[#allocation2] sm:$0xff] }
  0xdf   :  { %1700 = vmatprep.mubr.bf16.mxu1 %v4725_v34  ;;  %v4064_v34 = vld [vmem:[#allocation8 + $0x2cc] ss:$16 sps:$4 sm:$0xff]  }
  0xe0   :  { %1630 = vmatpush1.bf16.msra.mxu0 %v4032_v18  ;;  %v4738_v18 = vld [vmem:[#allocation2 + $0x8] sm:$0xff] }
  0xe1   :  { %1671 = vmatpush1.bf16.msra.mxu1 %v4035_v19  ;;  %1631 = vmatprep.subr.bf16.mxu0 %v4040_v20  ;;  %v4125_v19 = vld [vmem:[#allocation7 + $0x200] ss:$16 sps:$4 sm:$0xff]   ;;  %v4130_v20 = vld [vmem:[#allocation7 + $0x24] ss:$16 sps:$4 sm:$0xff]  }
  0xe2   :  { %1672 = vmatprep.subr.bf16.mxu1 %v4043_v21  ;;  %v4133_v21 = vld [vmem:[#allocation7 + $0x224] ss:$16 sps:$4 sm:$0xff]  }
  0xe4   :  { %1632 = vmatpush1.bf16.msra.mxu0 %v4038_v22  ;;  %v4742_v22 = vcombine.high %v4736_v17, %v4736_v17 }
  0xe5   :  { %1673 = vmatpush1.bf16.msra.mxu1 %v4041_v23  ;;  %1633 = vmatprep.subr.bf16.mxu0 %v4046_v24  ;;  %v4746_v23 = vcombine.high %v4738_v18, %v4738_v18  ;;  %v4128_v24 = vld [vmem:[#allocation7 + $0x20] ss:$16 sps:$4 sm:$0xff]  }
  0xe6   :  { %1674 = vmatprep.subr.bf16.mxu1 %v4049_v6  ;;  %v4131_v6 = vld [vmem:[#allocation7 + $0x220] ss:$16 sps:$4 sm:$0xff]  }
  0xe8   :  { %1634 = vmatpush1.bf16.msra.mxu0 %v4044_v25  ;;  %v4136_v25 = vld [vmem:[#allocation7 + $0x44] ss:$16 sps:$4 sm:$0xff]  }
  0xe9   :  { %1675 = vmatpush1.bf16.msra.mxu1 %v4047_v26  ;;  %1635 = vmatprep.subr.bf16.mxu0 %v4052_v27  ;;  %v4139_v26 = vld [vmem:[#allocation7 + $0x244] ss:$16 sps:$4 sm:$0xff]   ;;  %v4134_v27 = vld [vmem:[#allocation7 + $0x40] ss:$16 sps:$4 sm:$0xff]  }
  0xea   :  { %1676 = vmatprep.subr.bf16.mxu1 %v4055_v28  ;;  %v4137_v28 = vld [vmem:[#allocation7 + $0x240] ss:$16 sps:$4 sm:$0xff]  }
  0xec   :  { %1636 = vmatpush1.bf16.msra.mxu0 %v4050_v29  ;;  %v4140_v29 = vld [vmem:[#allocation7 + $0x60] ss:$16 sps:$4 sm:$0xff]  }
  0xed   :  { %1677 = vmatpush1.bf16.msra.mxu1 %v4053_v51  ;;  %1637 = vmatprep.subr.bf16.mxu0 %v4058_v30  ;;  %v4143_v51 = vld [vmem:[#allocation7 + $0x260] ss:$16 sps:$4 sm:$0xff]   ;;  %v4148_v30 = vld [vmem:[#allocation7 + $0x84] ss:$16 sps:$4 sm:$0xff]  }
  0xee   :  { %1678 = vmatprep.subr.bf16.mxu1 %v4061_v31  ;;  %v4151_v31 = vld [vmem:[#allocation7 + $0x284] ss:$16 sps:$4 sm:$0xff]  }
  0xf0   :  { %1638 = vmatpush1.bf16.msra.mxu0 %v4056_v32  ;;  %v4146_v32 = vld [vmem:[#allocation7 + $0x80] ss:$16 sps:$4 sm:$0xff]  }
  0xf1   :  { %1679 = vmatpush1.bf16.msra.mxu1 %v4059_v33  ;;  %1639 = vmatprep.subr.bf16.mxu0 %v4064_v34  ;;  %v4149_v33 = vld [vmem:[#allocation7 + $0x280] ss:$16 sps:$4 sm:$0xff]   ;;  %v4154_v34 = vld [vmem:[#allocation7 + $0xa4] ss:$16 sps:$4 sm:$0xff]  }
  0xf2   :  { %1680 = vmatprep.subr.bf16.mxu1 %v4067_v35  ;;  %v4157_v35 = vld [vmem:[#allocation7 + $0x2a4] ss:$16 sps:$4 sm:$0xff]  }
  0xf4   :  { %1640 = vmatpush1.bf16.msra.mxu0 %v4062_v36  ;;  %v4152_v36 = vld [vmem:[#allocation7 + $0xa0] ss:$16 sps:$4 sm:$0xff]  }
  0xf5   :  { %1681 = vmatpush1.bf16.msra.mxu1 %v4065_v37  ;;  %1641 = vmatprep.subr.bf16.mxu0 %v4070_v38  ;;  %v4155_v37 = vld [vmem:[#allocation7 + $0x2a0] ss:$16 sps:$4 sm:$0xff]   ;;  %v4160_v38 = vld [vmem:[#allocation7 + $0xc4] ss:$16 sps:$4 sm:$0xff]  }
  0xf6   :  { %1682 = vmatprep.subr.bf16.mxu1 %v4073_v39  ;;  %v4163_v39 = vld [vmem:[#allocation7 + $0x2c4] ss:$16 sps:$4 sm:$0xff]  }
  0xf8   :  { %1642 = vmatpush1.bf16.msra.mxu0 %v4068_v40  ;;  %v4158_v40 = vld [vmem:[#allocation7 + $0xc0] ss:$16 sps:$4 sm:$0xff]  }
  0xf9   :  { %1683 = vmatpush1.bf16.msra.mxu1 %v4071_v41  ;;  %1643 = vmatprep.subr.bf16.mxu0 %v4076_v42  ;;  %v4161_v41 = vld [vmem:[#allocation7 + $0x2c0] ss:$16 sps:$4 sm:$0xff]   ;;  %v4166_v42 = vld [vmem:[#allocation7 + $0xe4] ss:$16 sps:$4 sm:$0xff]  }
  0xfa   :  { %1684 = vmatprep.subr.bf16.mxu1 %v4079_v43  ;;  %v4169_v43 = vld [vmem:[#allocation7 + $0x2e4] ss:$16 sps:$4 sm:$0xff]  }
  0xfc   :  { %1644 = vmatpush1.bf16.msra.mxu0 %v4074_v44  ;;  %v4164_v44 = vld [vmem:[#allocation7 + $0xe0] ss:$16 sps:$4 sm:$0xff]  }
  0xfd   :  { %1685 = vmatpush1.bf16.msra.mxu1 %v4077_v45  ;;  %1645 = vmatprep.subr.bf16.mxu0 %v4082_v46  ;;  %v4167_v45 = vld [vmem:[#allocation7 + $0x2e0] ss:$16 sps:$4 sm:$0xff]   ;;  %v4172_v46 = vld [vmem:[#allocation7 + $0x104] ss:$16 sps:$4 sm:$0xff]  }
  0xfe   :  { %1686 = vmatprep.subr.bf16.mxu1 %v4085_v47  ;;  %v4175_v47 = vld [vmem:[#allocation7 + $0x304] ss:$16 sps:$4 sm:$0xff]  }
 0x100   :  { %1646 = vmatpush1.bf16.msra.mxu0 %v4080_v48  ;;  %v4170_v48 = vld [vmem:[#allocation7 + $0x100] ss:$16 sps:$4 sm:$0xff]  }
 0x101   :  { %1687 = vmatpush1.bf16.msra.mxu1 %v4083_v49  ;;  %1647 = vmatprep.subr.bf16.mxu0 %v4088_v50  ;;  %v4173_v49 = vld [vmem:[#allocation7 + $0x300] ss:$16 sps:$4 sm:$0xff]   ;;  %v4178_v50 = vld [vmem:[#allocation7 + $0x124] ss:$16 sps:$4 sm:$0xff]  }
 0x102   :  { %1688 = vmatprep.subr.bf16.mxu1 %v4091_v52  ;;  %v4181_v52 = vld [vmem:[#allocation7 + $0x324] ss:$16 sps:$4 sm:$0xff]  }
 0x104   :  { %1648 = vmatpush1.bf16.msra.mxu0 %v4086_v53  ;;  %v4176_v53 = vld [vmem:[#allocation7 + $0x120] ss:$16 sps:$4 sm:$0xff]  }
 0x105   :  { %1689 = vmatpush1.bf16.msra.mxu1 %v4089_v54  ;;  %1649 = vmatprep.subr.bf16.mxu0 %v4094_v55  ;;  %v4179_v54 = vld [vmem:[#allocation7 + $0x320] ss:$16 sps:$4 sm:$0xff]   ;;  %v4184_v55 = vld [vmem:[#allocation7 + $0x144] ss:$16 sps:$4 sm:$0xff]  }
 0x106   :  { %1690 = vmatprep.subr.bf16.mxu1 %v4097_v56  ;;  %v4187_v56 = vld [vmem:[#allocation7 + $0x344] ss:$16 sps:$4 sm:$0xff]  }
 0x108   :  { %1650 = vmatpush1.bf16.msra.mxu0 %v4092_v57  ;;  %v4182_v57 = vld [vmem:[#allocation7 + $0x140] ss:$16 sps:$4 sm:$0xff]  }
 0x109   :  { %1691 = vmatpush1.bf16.msra.mxu1 %v4095_v58  ;;  %1651 = vmatprep.subr.bf16.mxu0 %v4100_v59  ;;  %v4185_v58 = vld [vmem:[#allocation7 + $0x340] ss:$16 sps:$4 sm:$0xff]   ;;  %v4190_v59 = vld [vmem:[#allocation7 + $0x164] ss:$16 sps:$4 sm:$0xff]  }
 0x10a   :  { %1692 = vmatprep.subr.bf16.mxu1 %v4103_v60  ;;  %v4193_v60 = vld [vmem:[#allocation7 + $0x364] ss:$16 sps:$4 sm:$0xff]  }
 0x10c   :  { %1652 = vmatpush1.bf16.msra.mxu0 %v4098_v61  ;;  %v4188_v61 = vld [vmem:[#allocation7 + $0x160] ss:$16 sps:$4 sm:$0xff]  }
 0x10d   :  { %1693 = vmatpush1.bf16.msra.mxu1 %v4101_v62  ;;  %1653 = vmatprep.subr.bf16.mxu0 %v4106_v63  ;;  %v4191_v62 = vld [vmem:[#allocation7 + $0x360] ss:$16 sps:$4 sm:$0xff]   ;;  %v4196_v63 = vld [vmem:[#allocation7 + $0x184] ss:$16 sps:$4 sm:$0xff]  }
 0x10e   :  { %1694 = vmatprep.subr.bf16.mxu1 %v4109_v0  ;;  %v4199_v0 = vld [vmem:[#allocation7 + $0x384] ss:$16 sps:$4 sm:$0xff]  }
 0x110   :  { %1654 = vmatpush1.bf16.msra.mxu0 %v4104_v1  ;;  %v4194_v1 = vld [vmem:[#allocation7 + $0x180] ss:$16 sps:$4 sm:$0xff]  }
 0x111   :  { %1695 = vmatpush1.bf16.msra.mxu1 %v4107_v2  ;;  %1655 = vmatprep.subr.bf16.mxu0 %v4112_v3  ;;  %v4197_v2 = vld [vmem:[#allocation7 + $0x380] ss:$16 sps:$4 sm:$0xff]   ;;  %v4202_v3 = vld [vmem:[#allocation7 + $0x1a4] ss:$16 sps:$4 sm:$0xff]  }
 0x112   :  { %1696 = vmatprep.subr.bf16.mxu1 %v4115_v4  ;;  %v4205_v4 = vld [vmem:[#allocation7 + $0x3a4] ss:$16 sps:$4 sm:$0xff]  }
 0x114   :  { %1656 = vmatpush1.bf16.msra.mxu0 %v4110_v5  ;;  %v4200_v5 = vld [vmem:[#allocation7 + $0x1a0] ss:$16 sps:$4 sm:$0xff]  }
 0x115   :  { %1697 = vmatpush1.bf16.msra.mxu1 %v4113_v8  ;;  %1657 = vmatprep.subr.bf16.mxu0 %v4118_v9  ;;  %v4203_v8 = vld [vmem:[#allocation7 + $0x3a0] ss:$16 sps:$4 sm:$0xff]   ;;  %v4208_v9 = vld [vmem:[#allocation7 + $0x1c4] ss:$16 sps:$4 sm:$0xff]  }
 0x116   :  { %1698 = vmatprep.subr.bf16.mxu1 %v4121_v10  ;;  %v4211_v10 = vld [vmem:[#allocation7 + $0x3c4] ss:$16 sps:$4 sm:$0xff]  }
 0x118   :  { %1658 = vmatpush1.bf16.msra.mxu0 %v4116_v11  ;;  %v4206_v11 = vld [vmem:[#allocation7 + $0x1c0] ss:$16 sps:$4 sm:$0xff]  }
 0x119   :  { %1699 = vmatpush1.bf16.msra.mxu1 %v4119_v12  ;;  %2690 = vmatprep.subr.bf16.mxu0 %v4124_v14  ;;  %v4209_v12 = vld [vmem:[#allocation7 + $0x3c0] ss:$16 sps:$4 sm:$0xff]   ;;  %v4214_v14 = vld [vmem:[#allocation7 + $0x1e4] ss:$16 sps:$4 sm:$0xff]  }
 0x11a   :  { %2731 = vmatprep.subr.bf16.mxu1 %v4127_v15  ;;  %v4217_v15 = vld [vmem:[#allocation7 + $0x3e4] ss:$16 sps:$4 sm:$0xff]  }
 0x11b   :  { %1660 = vmatmul.mubr.bf16.vlgmr.msra.gmra.mrb[8].mxu0 %v4716_v7  ;;  %v4142_v7 = vld [vmem:[#allocation7 + $0x64] ss:$16 sps:$4 sm:$0xff]  }
 0x11c   :  { %1701 = vmatmul.mubr.bf16.vlgmr.msra.gmra.mrb[8].mxu1 %v4730_v13  ;;  %2691 = vmatpush1.bf16.msra.mxu0 %v4122_v16  ;;  %v4145_v13 = vld [vmem:[#allocation7 + $0x264] ss:$16 sps:$4 sm:$0xff]   ;;  %v4212_v16 = vld [vmem:[#allocation7 + $0x1e0] ss:$16 sps:$4 sm:$0xff]  }
 0x11d   :  { %2732 = vmatpush1.bf16.msra.mxu1 %v4125_v19  ;;  %2692 = vmatprep.subr.bf16.mxu0 %v4130_v20  ;;  %v4215_v19 = vld [vmem:[#allocation7 + $0x3e0] ss:$16 sps:$4 sm:$0xff]   ;;  %v4224_v20 = vld [vmem:[#allocation7 + $0x404] ss:$16 sps:$4 sm:$0xff]  }
 0x11e   :  { %2733 = vmatprep.subr.bf16.mxu1 %v4133_v21  ;;  %2722 = vmatprep.mubr.bf16.mxu0 %v4742_v22  ;;  %v4227_v21 = vld [vmem:[#allocation7 + $0xc] ss:$16 sps:$4 sm:$0xff]  }
 0x11f   :  { %2763 = vmatprep.mubr.bf16.mxu1 %v4746_v23 }
 0x120   :  { %2693 = vmatpush1.bf16.msra.mxu0 %v4128_v24  ;;  %v4754_v24 = vcombine.low %v4736_v17, %v4736_v17 }
 0x121   :  { %2734 = vmatpush1.bf16.msra.mxu1 %v4131_v6  ;;  %2694 = vmatprep.subr.bf16.mxu0 %v4136_v25  ;;  %v4758_v6 = vcombine.low %v4738_v18, %v4738_v18  ;;  %v4760_v25 = vld [vmem:[#allocation2 + $0x10] sm:$0xff] }
 0x122   :  { %2735 = vmatprep.subr.bf16.mxu1 %v4139_v26  ;;  %v4222_v26 = vld [vmem:[#allocation7 + $0x400] ss:$16 sps:$4 sm:$0xff]   ;;  %v4764_v17 = vcombine.high %v4760_v25, %v4760_v25  ;;  %v4236_v18 = vld [vmem:[#allocation7 + $0x444] ss:$16 sps:$4 sm:$0xff]  }
 0x124   :  { %2695 = vmatpush1.bf16.msra.mxu0 %v4134_v27  ;;  %v4225_v27 = vld [vmem:[#allocation7 + $0x8] ss:$16 sps:$4 sm:$0xff]  }
 0x125   :  { %2736 = vmatpush1.bf16.msra.mxu1 %v4137_v28  ;;  %2696 = vmatprep.subr.bf16.mxu0 %v4142_v7  ;;  %v4230_v28 = vld [vmem:[#allocation7 + $0x424] ss:$16 sps:$4 sm:$0xff]   ;;  %v4233_v7 = vld [vmem:[#allocation7 + $0x2c] ss:$16 sps:$4 sm:$0xff]  }
 0x126   :  { %2737 = vmatprep.subr.bf16.mxu1 %v4145_v13  ;;  %v4228_v13 = vld [vmem:[#allocation7 + $0x420] ss:$16 sps:$4 sm:$0xff]  }
 0x128   :  { %2697 = vmatpush1.bf16.msra.mxu0 %v4140_v29  ;;  %v4231_v29 = vld [vmem:[#allocation7 + $0x28] ss:$16 sps:$4 sm:$0xff]  }
 0x129   :  { %2738 = vmatpush1.bf16.msra.mxu1 %v4143_v51  ;;  %2698 = vmatprep.subr.bf16.mxu0 %v4148_v30  ;;  %v4239_v51 = vld [vmem:[#allocation7 + $0x4c] ss:$16 sps:$4 sm:$0xff]   ;;  %v4234_v30 = vld [vmem:[#allocation7 + $0x440] ss:$16 sps:$4 sm:$0xff]  }
 0x12a   :  { %2739 = vmatprep.subr.bf16.mxu1 %v4151_v31  ;;  %v4237_v31 = vld [vmem:[#allocation7 + $0x48] ss:$16 sps:$4 sm:$0xff]  }
 0x12c   :  { %2699 = vmatpush1.bf16.msra.mxu0 %v4146_v32  ;;  %v4242_v32 = vld [vmem:[#allocation7 + $0x464] ss:$16 sps:$4 sm:$0xff]  }
 0x12d   :  { %2740 = vmatpush1.bf16.msra.mxu1 %v4149_v33  ;;  %2700 = vmatprep.subr.bf16.mxu0 %v4154_v34  ;;  %v4245_v33 = vld [vmem:[#allocation7 + $0x6c] ss:$16 sps:$4 sm:$0xff]   ;;  %v4240_v34 = vld [vmem:[#allocation7 + $0x460] ss:$16 sps:$4 sm:$0xff]  }
 0x12e   :  { %2741 = vmatprep.subr.bf16.mxu1 %v4157_v35  ;;  %v4243_v35 = vld [vmem:[#allocation7 + $0x68] ss:$16 sps:$4 sm:$0xff]  }
 0x130   :  { %2701 = vmatpush1.bf16.msra.mxu0 %v4152_v36  ;;  %v4248_v36 = vld [vmem:[#allocation7 + $0x484] ss:$16 sps:$4 sm:$0xff]  }
 0x131   :  { %2742 = vmatpush1.bf16.msra.mxu1 %v4155_v37  ;;  %2702 = vmatprep.subr.bf16.mxu0 %v4160_v38  ;;  %v4251_v37 = vld [vmem:[#allocation7 + $0x8c] ss:$16 sps:$4 sm:$0xff]   ;;  %v4246_v38 = vld [vmem:[#allocation7 + $0x480] ss:$16 sps:$4 sm:$0xff]  }
 0x132   :  { %2743 = vmatprep.subr.bf16.mxu1 %v4163_v39  ;;  %v4249_v39 = vld [vmem:[#allocation7 + $0x88] ss:$16 sps:$4 sm:$0xff]  }
 0x134   :  { %2703 = vmatpush1.bf16.msra.mxu0 %v4158_v40  ;;  %v4254_v40 = vld [vmem:[#allocation7 + $0x4a4] ss:$16 sps:$4 sm:$0xff]  }
 0x135   :  { %2744 = vmatpush1.bf16.msra.mxu1 %v4161_v41  ;;  %2704 = vmatprep.subr.bf16.mxu0 %v4166_v42  ;;  %v4257_v41 = vld [vmem:[#allocation7 + $0xac] ss:$16 sps:$4 sm:$0xff]   ;;  %v4255_v42 = vld [vmem:[#allocation7 + $0xa8] ss:$16 sps:$4 sm:$0xff]  }
 0x136   :  { %2745 = vmatprep.subr.bf16.mxu1 %v4169_v43  ;;  %v4260_v43 = vld [vmem:[#allocation7 + $0x4c4] ss:$16 sps:$4 sm:$0xff]  }
 0x138   :  { %2705 = vmatpush1.bf16.msra.mxu0 %v4164_v44  ;;  %v4263_v44 = vld [vmem:[#allocation7 + $0xcc] ss:$16 sps:$4 sm:$0xff]  }
 0x139   :  { %2746 = vmatpush1.bf16.msra.mxu1 %v4167_v45  ;;  %2706 = vmatprep.subr.bf16.mxu0 %v4172_v46 }
 0x13a   :  { %2747 = vmatprep.subr.bf16.mxu1 %v4175_v47 }
 0x13c   :  { %2707 = vmatpush1.bf16.msra.mxu0 %v4170_v48 }
 0x13d   :  { %2748 = vmatpush1.bf16.msra.mxu1 %v4173_v49  ;;  %2708 = vmatprep.subr.bf16.mxu0 %v4178_v50 }
 0x13e   :  { %2749 = vmatprep.subr.bf16.mxu1 %v4181_v52 }
 0x140   :  { %2709 = vmatpush1.bf16.msra.mxu0 %v4176_v53 }
 0x141   :  { %2750 = vmatpush1.bf16.msra.mxu1 %v4179_v54  ;;  %2710 = vmatprep.subr.bf16.mxu0 %v4184_v55  ;;  %v4258_v54 = vld [vmem:[#allocation7 + $0x4c0] ss:$16 sps:$4 sm:$0xff]   ;;  %v4261_v55 = vld [vmem:[#allocation7 + $0xc8] ss:$16 sps:$4 sm:$0xff]  }
 0x142   :  { %2751 = vmatprep.subr.bf16.mxu1 %v4187_v56 }
 0x144   :  { %2711 = vmatpush1.bf16.msra.mxu0 %v4182_v57 }
 0x145   :  { %2752 = vmatpush1.bf16.msra.mxu1 %v4185_v58  ;;  %2712 = vmatprep.subr.bf16.mxu0 %v4190_v59  ;;  %v4266_v58 = vld [vmem:[#allocation7 + $0x4e4] ss:$16 sps:$4 sm:$0xff]   ;;  %v4269_v59 = vld [vmem:[#allocation7 + $0xec] ss:$16 sps:$4 sm:$0xff]  }
 0x146   :  { %2753 = vmatprep.subr.bf16.mxu1 %v4193_v60  ;;  %v4264_v60 = vld [vmem:[#allocation7 + $0x4e0] ss:$16 sps:$4 sm:$0xff]  }
 0x148   :  { %2713 = vmatpush1.bf16.msra.mxu0 %v4188_v61  ;;  %v4267_v61 = vld [vmem:[#allocation7 + $0xe8] ss:$16 sps:$4 sm:$0xff]  }
 0x149   :  { %2754 = vmatpush1.bf16.msra.mxu1 %v4191_v62  ;;  %2714 = vmatprep.subr.bf16.mxu0 %v4196_v63  ;;  %v4272_v62 = vld [vmem:[#allocation7 + $0x504] ss:$16 sps:$4 sm:$0xff]   ;;  %v4275_v63 = vld [vmem:[#allocation7 + $0x10c] ss:$16 sps:$4 sm:$0xff]  }
 0x14a   :  { %2755 = vmatprep.subr.bf16.mxu1 %v4199_v0  ;;  %v4270_v0 = vld [vmem:[#allocation7 + $0x500] ss:$16 sps:$4 sm:$0xff]  }
 0x14c   :  { %2715 = vmatpush1.bf16.msra.mxu0 %v4194_v1  ;;  %v4273_v1 = vld [vmem:[#allocation7 + $0x108] ss:$16 sps:$4 sm:$0xff]  }
 0x14d   :  { %2756 = vmatpush1.bf16.msra.mxu1 %v4197_v2  ;;  %2716 = vmatprep.subr.bf16.mxu0 %v4202_v3  ;;  %v4278_v2 = vld [vmem:[#allocation7 + $0x524] ss:$16 sps:$4 sm:$0xff]   ;;  %v4281_v3 = vld [vmem:[#allocation7 + $0x12c] ss:$16 sps:$4 sm:$0xff]  }
 0x14e   :  { %2757 = vmatprep.subr.bf16.mxu1 %v4205_v4  ;;  %v4276_v4 = vld [vmem:[#allocation7 + $0x520] ss:$16 sps:$4 sm:$0xff]  }
 0x150   :  { %2717 = vmatpush1.bf16.msra.mxu0 %v4200_v5  ;;  %v4279_v5 = vld [vmem:[#allocation7 + $0x128] ss:$16 sps:$4 sm:$0xff]  }
 0x151   :  { %2758 = vmatpush1.bf16.msra.mxu1 %v4203_v8  ;;  %2718 = vmatprep.subr.bf16.mxu0 %v4208_v9  ;;  %v4284_v8 = vld [vmem:[#allocation7 + $0x544] ss:$16 sps:$4 sm:$0xff]   ;;  %v4287_v9 = vld [vmem:[#allocation7 + $0x14c] ss:$16 sps:$4 sm:$0xff]  }
 0x152   :  { %2759 = vmatprep.subr.bf16.mxu1 %v4211_v10  ;;  %v4282_v10 = vld [vmem:[#allocation7 + $0x540] ss:$16 sps:$4 sm:$0xff]  }
 0x154   :  { %2719 = vmatpush1.bf16.msra.mxu0 %v4206_v11  ;;  %v4285_v11 = vld [vmem:[#allocation7 + $0x148] ss:$16 sps:$4 sm:$0xff]  }
 0x155   :  { %2760 = vmatpush1.bf16.msra.mxu1 %v4209_v12  ;;  %2720 = vmatprep.subr.bf16.mxu0 %v4214_v14  ;;  %v4290_v12 = vld [vmem:[#allocation7 + $0x564] ss:$16 sps:$4 sm:$0xff]   ;;  %v4293_v14 = vld [vmem:[#allocation7 + $0x16c] ss:$16 sps:$4 sm:$0xff]  }
 0x156   :  { %2761 = vmatprep.subr.bf16.mxu1 %v4217_v15  ;;  %v4288_v15 = vld [vmem:[#allocation7 + $0x560] ss:$16 sps:$4 sm:$0xff]  }
 0x158   :  { %2721 = vmatpush1.bf16.msra.mxu0 %v4212_v16  ;;  %v4291_v16 = vld [vmem:[#allocation7 + $0x168] ss:$16 sps:$4 sm:$0xff]  }
 0x159   :  { %2762 = vmatpush1.bf16.msra.mxu1 %v4215_v19  ;;  %2772 = vmatprep.subr.bf16.mxu0 %v4224_v20  ;;  %v4296_v19 = vld [vmem:[#allocation7 + $0x584] ss:$16 sps:$4 sm:$0xff]   ;;  %v4299_v20 = vld [vmem:[#allocation7 + $0x18c] ss:$16 sps:$4 sm:$0xff]  }
 0x15a   :  { %2813 = vmatprep.subr.bf16.mxu1 %v4227_v21  ;;  %v4294_v21 = vld [vmem:[#allocation7 + $0x580] ss:$16 sps:$4 sm:$0xff]  }
 0x15b   :  { %2723 = vmatmul.mubr.bf16.vlgmr.msra.gmra.mrb[12].mxu0 %v4754_v24 }
 0x15c   :  { %2764 = vmatmul.mubr.bf16.vlgmr.msra.gmra.mrb[12].mxu1 %v4758_v6  ;;  %2773 = vmatpush1.bf16.msra.mxu0 %v4222_v26  ;;  %v4297_v26 = vld [vmem:[#allocation7 + $0x188] ss:$16 sps:$4 sm:$0xff]  }
 0x15d   :  { %2814 = vmatpush1.bf16.msra.mxu1 %v4225_v27  ;;  %2774 = vmatprep.subr.bf16.mxu0 %v4230_v28  ;;  %v4302_v27 = vld [vmem:[#allocation7 + $0x5a4] ss:$16 sps:$4 sm:$0xff]   ;;  %v4305_v28 = vld [vmem:[#allocation7 + $0x1ac] ss:$16 sps:$4 sm:$0xff]  }
 0x15e   :  { %2815 = vmatprep.subr.bf16.mxu1 %v4233_v7  ;;  %2804 = vmatprep.mubr.bf16.mxu0 %v4764_v17  ;;  %v4300_v7 = vld [vmem:[#allocation7 + $0x5a0] ss:$16 sps:$4 sm:$0xff]  }
 0x15f   :  { %2845 = vmatprep.mubr.bf16.mxu1 %v4742_v22  ;;  %v4252_v22 = vld [vmem:[#allocation7 + $0x4a0] ss:$16 sps:$4 sm:$0xff]  }
 0x160   :  { %2775 = vmatpush1.bf16.msra.mxu0 %v4228_v13  ;;  %v4303_v13 = vld [vmem:[#allocation7 + $0x1a8] ss:$16 sps:$4 sm:$0xff]  }
 0x161   :  { %2816 = vmatpush1.bf16.msra.mxu1 %v4231_v29  ;;  %2776 = vmatprep.subr.bf16.mxu0 %v4236_v18  ;;  %v4308_v29 = vld [vmem:[#allocation7 + $0x5c4] ss:$16 sps:$4 sm:$0xff]   ;;  %v4311_v18 = vld [vmem:[#allocation7 + $0x1cc] ss:$16 sps:$4 sm:$0xff]  }
 0x162   :  { %2817 = vmatprep.subr.bf16.mxu1 %v4239_v51  ;;  %v4306_v51 = vld [vmem:[#allocation7 + $0x5c0] ss:$16 sps:$4 sm:$0xff]  }
 0x164   :  { %2777 = vmatpush1.bf16.msra.mxu0 %v4234_v30  ;;  %v4309_v30 = vld [vmem:[#allocation7 + $0x1c8] ss:$16 sps:$4 sm:$0xff]  }
 0x165   :  { %2818 = vmatpush1.bf16.msra.mxu1 %v4237_v31  ;;  %2778 = vmatprep.subr.bf16.mxu0 %v4242_v32  ;;  %v4314_v31 = vld [vmem:[#allocation7 + $0x5e4] ss:$16 sps:$4 sm:$0xff]   ;;  %v4317_v32 = vld [vmem:[#allocation7 + $0x1ec] ss:$16 sps:$4 sm:$0xff]  }
 0x166   :  { %2819 = vmatprep.subr.bf16.mxu1 %v4245_v33  ;;  %v4312_v33 = vld [vmem:[#allocation7 + $0x5e0] ss:$16 sps:$4 sm:$0xff]  }
 0x168   :  { %2779 = vmatpush1.bf16.msra.mxu0 %v4240_v34  ;;  %v4315_v34 = vld [vmem:[#allocation7 + $0x1e8] ss:$16 sps:$4 sm:$0xff]  }
 0x169   :  { %2820 = vmatpush1.bf16.msra.mxu1 %v4243_v35  ;;  %2780 = vmatprep.subr.bf16.mxu0 %v4248_v36  ;;  %v4322_v35 = vld [vmem:[#allocation7 + $0x20c] ss:$16 sps:$4 sm:$0xff]  }
 0x16a   :  { %2821 = vmatprep.subr.bf16.mxu1 %v4251_v37  ;;  %v4325_v36 = vld [vmem:[#allocation7 + $0x40c] ss:$16 sps:$4 sm:$0xff]   ;;  %v4776_v37 = vcombine.low %v4760_v25, %v4760_v25 }
 0x16b   :  { %v4334_v25 = vld [vmem:[#allocation7 + $0x24c] ss:$16 sps:$4 sm:$0xff]  }
 0x16c   :  { %2781 = vmatpush1.bf16.msra.mxu0 %v4246_v38  ;;  %v4320_v38 = vld [vmem:[#allocation7 + $0x208] ss:$16 sps:$4 sm:$0xff]  }
 0x16d   :  { %2822 = vmatpush1.bf16.msra.mxu1 %v4249_v39  ;;  %2782 = vmatprep.subr.bf16.mxu0 %v4254_v40  ;;  %v4323_v39 = vld [vmem:[#allocation7 + $0x408] ss:$16 sps:$4 sm:$0xff]   ;;  %v4328_v40 = vld [vmem:[#allocation7 + $0x22c] ss:$16 sps:$4 sm:$0xff]  }
 0x16e   :  { %2823 = vmatprep.subr.bf16.mxu1 %v4257_v41  ;;  %v1497_v45 = vpop.f32.mrb[0].mxu0  ;;  %v4331_v41 = vld [vmem:[#allocation7 + $0x42c] ss:$16 sps:$4 sm:$0xff]  }
 0x16f   :  { %v1538_v46 = vpop.f32.mrb[0].mxu1  ;;  %v1499_v48 = vpop.f32.mrb[1].mxu0 }
 0x170   :  { %v4770_v47 = vadd.f32 %v1538_v46, %v1497_v45  ;;  %v1540_v49 = vpop.f32.mrb[1].mxu1  ;;  %v1501_v52 = vpop.f32.mrb[2].mxu0  ;;  %2783 = vmatpush1.bf16.msra.mxu0 %v4252_v22  ;;  %v4326_v22 = vld [vmem:[#allocation7 + $0x228] ss:$16 sps:$4 sm:$0xff]   ;;  %v4340_v46 = vld [vmem:[#allocation7 + $0x26c] ss:$16 sps:$4 sm:$0xff]  }
 0x171   :  { %v4772_v50 = vadd.f32 %v1540_v49, %v1499_v48  ;;  %v1542_v53 = vpop.f32.mrb[2].mxu1  ;;  %2824 = vmatpush1.bf16.msra.mxu1 %v4255_v42  ;;  %v1502_v56 = vpop.f32.mrb[3].mxu0  ;;  %2784 = vmatprep.subr.bf16.mxu0 %v4260_v43  ;;  %v4329_v42 = vld [vmem:[#allocation7 + $0x428] ss:$16 sps:$4 sm:$0xff]   ;;  %v4337_v43 = vld [vmem:[#allocation7 + $0x44c] ss:$16 sps:$4 sm:$0xff]  }
 0x172   :  { %v1543_v57 = vpop.f32.mrb[3].mxu1  ;;  %2825 = vmatprep.subr.bf16.mxu1 %v4263_v44  ;;  %v4332_v44 = vld [vmem:[#allocation7 + $0x248] ss:$16 sps:$4 sm:$0xff]   ;;  %v4346_v52 = vld [vmem:[#allocation7 + $0x28c] ss:$16 sps:$4 sm:$0xff]  }
 0x173   :  { %v4335_v45 = vld [vmem:[#allocation7 + $0x448] ss:$16 sps:$4 sm:$0xff]   ;;  %v4349_v53 = vld [vmem:[#allocation7 + $0x48c] ss:$16 sps:$4 sm:$0xff]  }
 0x174   :  { %2785 = vmatpush1.bf16.msra.mxu0 %v4258_v54  ;;  %v4338_v48 = vld [vmem:[#allocation7 + $0x268] ss:$16 sps:$4 sm:$0xff]   ;;  %v4352_v54 = vld [vmem:[#allocation7 + $0x2ac] ss:$16 sps:$4 sm:$0xff]  }
 0x175   :  { %2826 = vmatpush1.bf16.msra.mxu1 %v4261_v55  ;;  %2786 = vmatprep.subr.bf16.mxu0 %v4266_v58  ;;  %v4341_v49 = vld [vmem:[#allocation7 + $0x468] ss:$16 sps:$4 sm:$0xff]   ;;  %v4355_v55 = vld [vmem:[#allocation7 + $0x4ac] ss:$16 sps:$4 sm:$0xff]  }
 0x176   :  { %2827 = vmatprep.subr.bf16.mxu1 %v4269_v59  ;;  %v4350_v56 = vld [vmem:[#allocation7 + $0x2a8] ss:$16 sps:$4 sm:$0xff]   ;;  %v4358_v58 = vld [vmem:[#allocation7 + $0x2cc] ss:$16 sps:$4 sm:$0xff]  }
 0x177   :  { %v4353_v57 = vld [vmem:[#allocation7 + $0x4a8] ss:$16 sps:$4 sm:$0xff]   ;;  %v4361_v59 = vld [vmem:[#allocation7 + $0x4cc] ss:$16 sps:$4 sm:$0xff]  }
 0x178   :  { %2787 = vmatpush1.bf16.msra.mxu0 %v4264_v60 }
 0x179   :  { %2828 = vmatpush1.bf16.msra.mxu1 %v4267_v61  ;;  %2788 = vmatprep.subr.bf16.mxu0 %v4272_v62 }
 0x17a   :  { %2829 = vmatprep.subr.bf16.mxu1 %v4275_v63 }
 0x17c   :  { %2789 = vmatpush1.bf16.msra.mxu0 %v4270_v0 }
 0x17d   :  { %2830 = vmatpush1.bf16.msra.mxu1 %v4273_v1  ;;  %2790 = vmatprep.subr.bf16.mxu0 %v4278_v2 }
 0x17e   :  { %2831 = vmatprep.subr.bf16.mxu1 %v4281_v3 }
 0x180   :  { %2791 = vmatpush1.bf16.msra.mxu0 %v4276_v4  ;;  %v4356_v4 = vld [vmem:[#allocation7 + $0x2c8] ss:$16 sps:$4 sm:$0xff]  }
 0x181   :  { %2832 = vmatpush1.bf16.msra.mxu1 %v4279_v5  ;;  %2792 = vmatprep.subr.bf16.mxu0 %v4284_v8  ;;  %v4359_v5 = vld [vmem:[#allocation7 + $0x4c8] ss:$16 sps:$4 sm:$0xff]  }
 0x182   :  { %2833 = vmatprep.subr.bf16.mxu1 %v4287_v9 }
 0x184   :  { %2793 = vmatpush1.bf16.msra.mxu0 %v4282_v10  ;;  %v4364_v10 = vld [vmem:[#allocation7 + $0x2ec] ss:$16 sps:$4 sm:$0xff]  }
 0x185   :  { %2834 = vmatpush1.bf16.msra.mxu1 %v4285_v11  ;;  %2794 = vmatprep.subr.bf16.mxu0 %v4290_v12  ;;  %v4367_v11 = vld [vmem:[#allocation7 + $0x4ec] ss:$16 sps:$4 sm:$0xff]   ;;  %v4365_v12 = vld [vmem:[#allocation7 + $0x4e8] ss:$16 sps:$4 sm:$0xff]  }
 0x186   :  { %2835 = vmatprep.subr.bf16.mxu1 %v4293_v14  ;;  %v4373_v14 = vld [vmem:[#allocation7 + $0x50c] ss:$16 sps:$4 sm:$0xff]  }
 0x188   :  { %2795 = vmatpush1.bf16.msra.mxu0 %v4288_v15  ;;  %v4368_v15 = vld [vmem:[#allocation7 + $0x308] ss:$16 sps:$4 sm:$0xff]  }
 0x189   :  { %2836 = vmatpush1.bf16.msra.mxu1 %v4291_v16  ;;  %2796 = vmatprep.subr.bf16.mxu0 %v4296_v19  ;;  %v4371_v16 = vld [vmem:[#allocation7 + $0x508] ss:$16 sps:$4 sm:$0xff]   ;;  %v4376_v19 = vld [vmem:[#allocation7 + $0x32c] ss:$16 sps:$4 sm:$0xff]  }
 0x18a   :  { %2837 = vmatprep.subr.bf16.mxu1 %v4299_v20  ;;  %v4379_v20 = vld [vmem:[#allocation7 + $0x52c] ss:$16 sps:$4 sm:$0xff]  }
 0x18c   :  { %2797 = vmatpush1.bf16.msra.mxu0 %v4294_v21  ;;  %v4374_v21 = vld [vmem:[#allocation7 + $0x328] ss:$16 sps:$4 sm:$0xff]  }
 0x18d   :  { %2838 = vmatpush1.bf16.msra.mxu1 %v4297_v26  ;;  %2798 = vmatprep.subr.bf16.mxu0 %v4302_v27  ;;  %v4377_v26 = vld [vmem:[#allocation7 + $0x528] ss:$16 sps:$4 sm:$0xff]   ;;  %v4382_v27 = vld [vmem:[#allocation7 + $0x34c] ss:$16 sps:$4 sm:$0xff]  }
 0x18e   :  { %2839 = vmatprep.subr.bf16.mxu1 %v4305_v28  ;;  %v4385_v28 = vld [vmem:[#allocation7 + $0x54c] ss:$16 sps:$4 sm:$0xff]  }
 0x190   :  { %2799 = vmatpush1.bf16.msra.mxu0 %v4300_v7  ;;  %v4380_v7 = vld [vmem:[#allocation7 + $0x348] ss:$16 sps:$4 sm:$0xff]  }
 0x191   :  { %2840 = vmatpush1.bf16.msra.mxu1 %v4303_v13  ;;  %2800 = vmatprep.subr.bf16.mxu0 %v4308_v29  ;;  %v4383_v13 = vld [vmem:[#allocation7 + $0x548] ss:$16 sps:$4 sm:$0xff]   ;;  %v4388_v29 = vld [vmem:[#allocation7 + $0x36c] ss:$16 sps:$4 sm:$0xff]  }
 0x192   :  { %2841 = vmatprep.subr.bf16.mxu1 %v4311_v18  ;;  %v4391_v18 = vld [vmem:[#allocation7 + $0x56c] ss:$16 sps:$4 sm:$0xff]  }
 0x194   :  { %2801 = vmatpush1.bf16.msra.mxu0 %v4306_v51  ;;  %v4386_v51 = vld [vmem:[#allocation7 + $0x368] ss:$16 sps:$4 sm:$0xff]  }
 0x195   :  { %2842 = vmatpush1.bf16.msra.mxu1 %v4309_v30  ;;  %2802 = vmatprep.subr.bf16.mxu0 %v4314_v31  ;;  %v4389_v30 = vld [vmem:[#allocation7 + $0x568] ss:$16 sps:$4 sm:$0xff]   ;;  %v4394_v31 = vld [vmem:[#allocation7 + $0x38c] ss:$16 sps:$4 sm:$0xff]  }
 0x196   :  { %2843 = vmatprep.subr.bf16.mxu1 %v4317_v32  ;;  %v4397_v32 = vld [vmem:[#allocation7 + $0x58c] ss:$16 sps:$4 sm:$0xff]  }
 0x198   :  { %2803 = vmatpush1.bf16.msra.mxu0 %v4312_v33  ;;  %v4392_v33 = vld [vmem:[#allocation7 + $0x388] ss:$16 sps:$4 sm:$0xff]  }
 0x199   :  { %2844 = vmatpush1.bf16.msra.mxu1 %v4315_v34  ;;  %2854 = vmatprep.subr.bf16.mxu0 %v4322_v35  ;;  %v4395_v34 = vld [vmem:[#allocation7 + $0x588] ss:$16 sps:$4 sm:$0xff]   ;;  %v4400_v35 = vld [vmem:[#allocation7 + $0x3ac] ss:$16 sps:$4 sm:$0xff]  }
 0x19a   :  { %2895 = vmatprep.subr.bf16.mxu1 %v4325_v36  ;;  %v4403_v36 = vld [vmem:[#allocation7 + $0x5ac] ss:$16 sps:$4 sm:$0xff]  }
 0x19b   :  { %2805 = vmatmul.mubr.bf16.vlgmr.msra.gmra.mrb[16].mxu0 %v4776_v37 }
 0x19c   :  { %2846 = vmatmul.mubr.bf16.vlgmr.msra.gmra.mrb[16].mxu1 %v4754_v24  ;;  %2855 = vmatpush1.bf16.msra.mxu0 %v4320_v38  ;;  %v4343_v24 = vld [vmem:[#allocation7 + $0x46c] ss:$16 sps:$4 sm:$0xff]   ;;  %v4398_v38 = vld [vmem:[#allocation7 + $0x3a8] ss:$16 sps:$4 sm:$0xff]  }
 0x19d   :  { %2896 = vmatpush1.bf16.msra.mxu1 %v4323_v39  ;;  %2856 = vmatprep.subr.bf16.mxu0 %v4328_v40  ;;  %v4401_v39 = vld [vmem:[#allocation7 + $0x5a8] ss:$16 sps:$4 sm:$0xff]   ;;  %v4406_v40 = vld [vmem:[#allocation7 + $0x3cc] ss:$16 sps:$4 sm:$0xff]  }
 0x19e   :  { %2897 = vmatprep.subr.bf16.mxu1 %v4331_v41  ;;  %2886 = vmatprep.mubr.bf16.mxu0 %v4746_v23  ;;  %v4344_v23 = vld [vmem:[#allocation7 + $0x288] ss:$16 sps:$4 sm:$0xff]   ;;  %v4409_v41 = vld [vmem:[#allocation7 + $0x5cc] ss:$16 sps:$4 sm:$0xff]  }
 0x19f   :  { %2927 = vmatprep.mubr.bf16.mxu1 %v4764_v17  ;;  %v4347_v17 = vld [vmem:[#allocation7 + $0x488] ss:$16 sps:$4 sm:$0xff]  }
 0x1a0   :  { %2857 = vmatpush1.bf16.msra.mxu0 %v4326_v22  ;;  %v4404_v22 = vld [vmem:[#allocation7 + $0x3c8] ss:$16 sps:$4 sm:$0xff]  }
 0x1a1   :  { %2898 = vmatpush1.bf16.msra.mxu1 %v4329_v42  ;;  %2858 = vmatprep.subr.bf16.mxu0 %v4334_v25  ;;  %v4407_v42 = vld [vmem:[#allocation7 + $0x5c8] ss:$16 sps:$4 sm:$0xff]   ;;  %v4412_v25 = vld [vmem:[#allocation7 + $0x3ec] ss:$16 sps:$4 sm:$0xff]  }
 0x1a2   :  { %2899 = vmatprep.subr.bf16.mxu1 %v4337_v43  ;;  %v4415_v43 = vld [vmem:[#allocation7 + $0x5ec] ss:$16 sps:$4 sm:$0xff]  }
 0x1a4   :  { %2859 = vmatpush1.bf16.msra.mxu0 %v4332_v44  ;;  %v4410_v44 = vld [vmem:[#allocation7 + $0x3e8] ss:$16 sps:$4 sm:$0xff]  }
 0x1a5   :  { %2900 = vmatpush1.bf16.msra.mxu1 %v4335_v45  ;;  %2860 = vmatprep.subr.bf16.mxu0 %v4340_v46  ;;  %v4413_v45 = vld [vmem:[#allocation7 + $0x5e8] ss:$16 sps:$4 sm:$0xff]   ;;  %v4416_v46 = vld [vmem:[#allocation10 + $0x40] sm:$0xff]  }
 0x1a6   :  { %2901 = vmatprep.subr.bf16.mxu1 %v4343_v24  ;;  %v4417_v24 = vld [vmem:[#allocation10] sm:$0xff]  }
 0x1a8   :  { %2861 = vmatpush1.bf16.msra.mxu0 %v4338_v48  ;;  %v4418_v48 = vld [vmem:[#allocation10 + $0x48] sm:$0xff]  }
 0x1a9   :  { %2902 = vmatpush1.bf16.msra.mxu1 %v4341_v49  ;;  %2862 = vmatprep.subr.bf16.mxu0 %v4346_v52  ;;  %v4419_v49 = vld [vmem:[#allocation10 + $0x8] sm:$0xff]   ;;  %v4420_v52 = vld [vmem:[#allocation10 + $0x50] sm:$0xff]  }
 0x1aa   :  { %2903 = vmatprep.subr.bf16.mxu1 %v4349_v53  ;;  %v4421_v53 = vld [vmem:[#allocation10 + $0x10] sm:$0xff]  }
 0x1ac   :  { %2863 = vmatpush1.bf16.msra.mxu0 %v4344_v23  ;;  %v4422_v23 = vld [vmem:[#allocation10 + $0x58] sm:$0xff]  }
 0x1ad   :  { %2904 = vmatpush1.bf16.msra.mxu1 %v4347_v17  ;;  %2864 = vmatprep.subr.bf16.mxu0 %v4352_v54  ;;  %v4423_v17 = vld [vmem:[#allocation10 + $0x18] sm:$0xff]   ;;  %v4424_v54 = vld [vmem:[#allocation10 + $0x60] sm:$0xff]  }
 0x1ae   :  { %2905 = vmatprep.subr.bf16.mxu1 %v4355_v55  ;;  %v1579_v60 = vpop.f32.mrb[4].mxu0  ;;  %v4425_v55 = vld [vmem:[#allocation10 + $0x20] sm:$0xff]  }
 0x1af   :  { %v4782_v61 = vpop.f32.mrb[4].mxu1  ;;  %v4785_v62 = vadd.f32 %v1579_v60, %v4770_v47  ;;  %v1581_v63 = vpop.f32.mrb[5].mxu0  ;;  %v4362_v47 = vld [vmem:[#allocation7 + $0x2e8] ss:$16 sps:$4 sm:$0xff]  }
 0x1b0   :  { %v4787_v0 = vpop.f32.mrb[5].mxu1  ;;  %v4790_v1 = vadd.f32 %v1581_v63, %v4772_v50  ;;  %v1583_v2 = vpop.f32.mrb[6].mxu0  ;;  %2865 = vmatpush1.bf16.msra.mxu0 %v4350_v56  ;;  %v4370_v50 = vld [vmem:[#allocation7 + $0x30c] ss:$16 sps:$4 sm:$0xff]   ;;  %v4428_v63 = vld [vmem:[#allocation10 + $0x70] sm:$0xff]  }
 0x1b1   :  { %v1624_v3 = vpop.f32.mrb[6].mxu1  ;;  %2906 = vmatpush1.bf16.msra.mxu1 %v4353_v57  ;;  %v1584_v8 = vpop.f32.mrb[7].mxu0  ;;  %2866 = vmatprep.subr.bf16.mxu0 %v4358_v58  ;;  %v4426_v56 = vld [vmem:[#allocation10 + $0x68] sm:$0xff]  }
 0x1b2   :  { %v1625_v9 = vpop.f32.mrb[7].mxu1  ;;  %2907 = vmatprep.subr.bf16.mxu1 %v4361_v59 }
 0x1b4   :  { %2867 = vmatpush1.bf16.msra.mxu0 %v4356_v4 }
 0x1b5   :  { %2908 = vmatpush1.bf16.msra.mxu1 %v4359_v5  ;;  %2868 = vmatprep.subr.bf16.mxu0 %v4364_v10  ;;  %v4429_v5 = vld [vmem:[#allocation10 + $0x30] sm:$0xff]  }
 0x1b6   :  { %2909 = vmatprep.subr.bf16.mxu1 %v4367_v11 }
 0x1b8   :  { %2869 = vmatpush1.bf16.msra.mxu0 %v4362_v47  ;;  %v4430_v47 = vld [vmem:[#allocation10 + $0x78] sm:$0xff]  }
 0x1b9   :  { %2910 = vmatpush1.bf16.msra.mxu1 %v4365_v12  ;;  %2870 = vmatprep.subr.bf16.mxu0 %v4370_v50  ;;  %v4431_v12 = vld [vmem:[#allocation10 + $0x38] sm:$0xff]   ;;  %v4433_v50 = vld [vmem:[#allocation10 + $0x80] sm:$0xff]  }
 0x1ba   :  { %2911 = vmatprep.subr.bf16.mxu1 %v4373_v14  ;;  %v4434_v14 = vld [vmem:[#allocation10 + $0xc8] sm:$0xff]  }
 0x1bc   :  { %2871 = vmatpush1.bf16.msra.mxu0 %v4368_v15  ;;  %v4436_v15 = vld [vmem:[#allocation10 + $0xd0] sm:$0xff]  }
 0x1bd   :  { %2912 = vmatpush1.bf16.msra.mxu1 %v4371_v16  ;;  %2872 = vmatprep.subr.bf16.mxu0 %v4376_v19  ;;  %v4437_v16 = vld [vmem:[#allocation10 + $0x90] sm:$0xff]   ;;  %v4438_v19 = vld [vmem:[#allocation10 + $0xd8] sm:$0xff]  }
 0x1be   :  { %2913 = vmatprep.subr.bf16.mxu1 %v4379_v20  ;;  %v4439_v20 = vld [vmem:[#allocation10 + $0x98] sm:$0xff]  }
 0x1c0   :  { %2873 = vmatpush1.bf16.msra.mxu0 %v4374_v21  ;;  %v4440_v21 = vld [vmem:[#allocation10 + $0xe0] sm:$0xff]  }
 0x1c1   :  { %2914 = vmatpush1.bf16.msra.mxu1 %v4377_v26  ;;  %2874 = vmatprep.subr.bf16.mxu0 %v4382_v27  ;;  %v4441_v26 = vld [vmem:[#allocation10 + $0xa0] sm:$0xff]   ;;  %v4442_v27 = vld [vmem:[#allocation10 + $0xe8] sm:$0xff]  }
 0x1c2   :  { %2915 = vmatprep.subr.bf16.mxu1 %v4385_v28 }
 0x1c4   :  { %2875 = vmatpush1.bf16.msra.mxu0 %v4380_v7 }
 0x1c5   :  { %2916 = vmatpush1.bf16.msra.mxu1 %v4383_v13  ;;  %2876 = vmatprep.subr.bf16.mxu0 %v4388_v29  ;;  %v4443_v13 = vld [vmem:[#allocation10 + $0xa8] sm:$0xff]  }
 0x1c6   :  { %2917 = vmatprep.subr.bf16.mxu1 %v4391_v18 }
 0x1c8   :  { %2877 = vmatpush1.bf16.msra.mxu0 %v4386_v51 }
 0x1c9   :  { %2918 = vmatpush1.bf16.msra.mxu1 %v4389_v30  ;;  %2878 = vmatprep.subr.bf16.mxu0 %v4394_v31 }
 0x1ca   :  { %2919 = vmatprep.subr.bf16.mxu1 %v4397_v32 }
 0x1cc   :  { %2879 = vmatpush1.bf16.msra.mxu0 %v4392_v33 }
 0x1cd   :  { %2920 = vmatpush1.bf16.msra.mxu1 %v4395_v34  ;;  %2880 = vmatprep.subr.bf16.mxu0 %v4400_v35 }
 0x1ce   :  { %2921 = vmatprep.subr.bf16.mxu1 %v4403_v36  ;;  %v4444_v36 = vld [vmem:[#allocation10 + $0xf0] sm:$0xff]  }
 0x1d0   :  { %2881 = vmatpush1.bf16.msra.mxu0 %v4398_v38 }
 0x1d1   :  { %2922 = vmatpush1.bf16.msra.mxu1 %v4401_v39  ;;  %2882 = vmatprep.subr.bf16.mxu0 %v4406_v40  ;;  %v4445_v39 = vld [vmem:[#allocation10 + $0xb0] sm:$0xff]   ;;  %v4446_v40 = vld [vmem:[#allocation10 + $0xf8] sm:$0xff]  }
 0x1d2   :  { %2923 = vmatprep.subr.bf16.mxu1 %v4409_v41  ;;  %v4447_v41 = vld [vmem:[#allocation10 + $0xb8] sm:$0xff]  }
 0x1d4   :  { %2883 = vmatpush1.bf16.msra.mxu0 %v4404_v22 }
 0x1d5   :  { %2924 = vmatpush1.bf16.msra.mxu1 %v4407_v42  ;;  %2884 = vmatprep.subr.bf16.mxu0 %v4412_v25 }
 0x1d6   :  { %2925 = vmatprep.subr.bf16.mxu1 %v4415_v43 }
 0x1d8   :  { %2885 = vmatpush1.bf16.msra.mxu0 %v4410_v44 }
 0x1d9   :  { %2926 = vmatpush1.bf16.msra.mxu1 %v4413_v45  ;;  %3774 = vmatprep.subr.bf16.mxu0 %v4416_v46 }
 0x1db   :  { %2887 = vmatmul.mubr.bf16.vlgmr.msra.gmra.mrb[20].mxu0 %v4758_v6  ;;  %v4427_v6 = vld [vmem:[#allocation10 + $0x28] sm:$0xff]  }
 0x1dc   :  { %2928 = vmatmul.mubr.bf16.vlgmr.msra.gmra.mrb[20].mxu1 %v4776_v37  ;;  %3775 = vmatpush3.bf16.msra.mxu0 %v4417_v24 }
 0x1dd   :  { %3776 = vmatprep.subr.bf16.mxu0 %v4418_v48 }
 0x1e0   :  { %3777 = vmatpush3.bf16.msra.mxu0 %v4419_v49 }
 0x1e1   :  { %3778 = vmatprep.subr.bf16.mxu0 %v4420_v52 }
 0x1e4   :  { %3779 = vmatpush3.bf16.msra.mxu0 %v4421_v53 }
 0x1e5   :  { %3780 = vmatprep.subr.bf16.mxu0 %v4422_v23 }
 0x1e8   :  { %3781 = vmatpush3.bf16.msra.mxu0 %v4423_v17 }
 0x1e9   :  { %3782 = vmatprep.subr.bf16.mxu0 %v4424_v54 }
 0x1ec   :  { %3783 = vmatpush3.bf16.msra.mxu0 %v4425_v55 }
 0x1ed   :  { %3784 = vmatprep.subr.bf16.mxu0 %v4426_v56 }
 0x1ee   :  { %v1661_v37 = vpop.f32.mrb[8].mxu0 }
 0x1ef   :  { %v1702_v57 = vpop.f32.mrb[8].mxu1  ;;  %v1662_v58 = vadd.f32 %v1661_v37, %v4782_v61  ;;  %v1663_v59 = vpop.f32.mrb[9].mxu0  ;;  %v4432_v61 = vld [vmem:[#allocation10 + $0xc0] sm:$0xff]  }
 0x1f0   :  { %v1704_v60 = vpop.f32.mrb[9].mxu1  ;;  %v1664_v2 = vadd.f32 %v1663_v59, %v4787_v0  ;;  %v1665_v3 = vpop.f32.mrb[10].mxu0  ;;  %3785 = vmatpush3.bf16.msra.mxu0 %v4427_v6  ;;  %3796 = vmatprep.subr.bf16.mxu1 %v4432_v61  ;;  %v4435_v0 = vld [vmem:[#allocation10 + $0x88] sm:$0xff]  }
 0x1f1   :  { %v1706_v4 = vpop.f32.mrb[10].mxu1  ;;  %v4796_v8 = vadd.f32 %v1702_v57, %v1662_v58  ;;  %v1666_v9 = vpop.f32.mrb[11].mxu0  ;;  %3786 = vmatprep.subr.bf16.mxu0 %v4428_v63  ;;  %3797 = vmatpush3.bf16.msra.mxu1 %v4433_v50 }
 0x1f2   :  { %v1707_v10 = vpop.f32.mrb[11].mxu1  ;;  %v4798_v11 = vadd.f32 %v1704_v60, %v1664_v2  ;;  %3798 = vmatprep.subr.bf16.mxu1 %v4434_v14 }
 0x1f4   :  { %3787 = vmatpush3.bf16.msra.mxu0 %v4429_v5 }
 0x1f5   :  { %3788 = vmatprep.subr.bf16.mxu0 %v4430_v47  ;;  %3799 = vmatpush3.bf16.msra.mxu1 %v4435_v0 }
 0x1f6   :  { %3800 = vmatprep.subr.bf16.mxu1 %v4436_v15 }
 0x1f8   :  { %3789 = vmatpush3.bf16.msra.mxu0 %v4431_v12 }
 0x1f9   :  { %3801 = vmatpush3.bf16.msra.mxu1 %v4437_v16 }
 0x1fa   :  { %3802 = vmatprep.subr.bf16.mxu1 %v4438_v19 }
 0x1fd   :  { %3803 = vmatpush3.bf16.msra.mxu1 %v4439_v20 }
 0x1fe   :  { %3804 = vmatprep.subr.bf16.mxu1 %v4440_v21 }
 0x201   :  { %3805 = vmatpush3.bf16.msra.mxu1 %v4441_v26 }
 0x202   :  { %3806 = vmatprep.subr.bf16.mxu1 %v4442_v27 }
 0x205   :  { %3807 = vmatpush3.bf16.msra.mxu1 %v4443_v13 }
 0x206   :  { %3808 = vmatprep.subr.bf16.mxu1 %v4444_v36 }
 0x209   :  { %3809 = vmatpush3.bf16.msra.mxu1 %v4445_v39 }
 0x20a   :  { %3810 = vmatprep.subr.bf16.mxu1 %v4446_v40 }
 0x20d   :  { %3811 = vmatpush3.bf16.msra.mxu1 %v4447_v41 }
 0x22e   :  { %v2724_v28 = vpop.f32.mrb[12].mxu0 }
 0x22f   :  { %v2765_v7 = vpop.f32.mrb[12].mxu1  ;;  %v2725_v29 = vadd.f32 %v2724_v28, %v4785_v62  ;;  %v2726_v18 = vpop.f32.mrb[13].mxu0  ;;  %v2938_v62 = vlaneseq }
 0x230   :  { %v2767_v51 = vpop.f32.mrb[13].mxu1  ;;  %v2727_v30 = vadd.f32 %v2726_v18, %v4790_v1  ;;  %v2728_v31 = vpop.f32.mrb[14].mxu0  ;;  %v2936_v1 = vld [vmem:[%s4828_s4] sm:$0xf] }
 0x231   :  { %v2769_v32 = vpop.f32.mrb[14].mxu1  ;;  %v2766_v33 = vadd.f32 %v2765_v7, %v2725_v29  ;;  %v2729_v34 = vpop.f32.mrb[15].mxu0  ;;  %v2939_v22 = vshrl.u32 %v2938_v62, 7  ;;  %v3314_v41 = vand.u32 127, %v2938_v62 }
 0x232   :  { %v2770_v35 = vpop.f32.mrb[15].mxu1  ;;  %v2768_v38 = vadd.f32 %v2767_v51, %v2727_v30  ;;  %v3741_v51 = vld [vmem:[%s4830_s6] ss:$0 sm:$0xff]  ;;  %s4601_s6 = smov [#allocation11]  }
 0x233   :  { %v2940_v42 = vsub.s32 0, %v2939_v22  ;;  %v2944_v25 = vsub.s32 1, %v2939_v22  ;;  %v2948_v63 = vsub.s32 2, %v2939_v22  ;;  %v2952_v2 = vsub.s32 3, %v2939_v22  ;;  %s3334_s15 = sshll.u32 %s4601_s6, 4  ;;  %s3335_s15 = int_to_ptr.vmem [resolvable:$true] %s3334_s15 }
 0x234   :  { %vm3315_vm0 = vcmp.lt.s32.totalorder %v3314_v41, 1  ;;  %s4562_s17 = scalar_lea.vmem %s3335_s15, 128  ;;  %p4567_p13 = scmp.lt.s32.totalorder %s3335_s15, %s3335_s15 }
 0x235   :  { %v2941_v43 = vrot.slane %v2936_v1, %v2940_v42  ;;  %v2945_v46 = vrot.slane %v2936_v1, %v2944_v25  ;;  %v2953_v47 = vrot.slane %v2936_v1, %v2952_v2  ;;  %p4563_p12 = scmp.ne.s32.totalorder %s3335_s15, %s4562_s17  ;;  %p4568_p0 = scmp.lt.s32.totalorder %s4562_s17, %s4562_s17 }
 0x237   :  { %p4569_p1 = por %p4568_p0, %p4567_p13 }
 0x239   :  { %p4570_p2 = pnand %p4569_p1, %p4563_p12 }
 0x26e   :  { %v2806_v44 = vpop.f32.mrb[16].mxu0 }
 0x26f   :  { %v2847_v45 = vpop.f32.mrb[16].mxu1  ;;  %v2807_v24 = vadd.f32 %v2806_v44, %v2766_v33  ;;  %v2808_v49 = vpop.f32.mrb[17].mxu0 }
 0x270   :  { %v2848_v48 = vadd.f32 %v2847_v45, %v4796_v8  ;;  %v2849_v52 = vpop.f32.mrb[17].mxu1  ;;  %v2809_v53 = vadd.f32 %v2808_v49, %v2768_v38  ;;  %v2810_v17 = vpop.f32.mrb[18].mxu0  ;;  %v2949_v8 = vrot.slane %v2936_v1, %v2948_v63 }
 0x271   :  { %v2850_v23 = vadd.f32 %v2849_v52, %v4798_v11  ;;  %v2851_v54 = vpop.f32.mrb[18].mxu1  ;;  %v2958_v55 = vadd.f32 %v2941_v43, %v2807_v24  ;;  %v2811_v56 = vpop.f32.mrb[19].mxu0 }
 0x272   :  { %v2852_v6 = vpop.f32.mrb[19].mxu1  ;;  %v2959_v37 = vadd.f32 %v2945_v46, %v2809_v53 }
 0x273   :  { %v2962_v57 = vmax.f32 %v2958_v55, 0.0 }
 0x274   :  { %v2963_v58 = vmax.f32 %v2959_v37, 0.0 }
 0x275   :  { %v2966_v60 = vpack.c.bf16 %v2962_v57, %v2962_v57 }
 0x276   :  { %v2967_v59 = vpack.c.bf16 %v2963_v58, %v2963_v58 }
 0x278   :  { %3265 = vmatprep.mubr.bf16.mxu0 %v2967_v59 }
 0x279   :  { %3266 = vmatmul.mubr.bf16.vlgmr.msra.gmra.mrb[24].mxu0 %v2966_v60 }
 0x2ae   :  { %v2888_v3 = vpop.f32.mrb[20].mxu0 }
 0x2af   :  { %v2929_v4 = vpop.f32.mrb[20].mxu1  ;;  %v2889_v5 = vadd.f32 %v2888_v3, %v2848_v48  ;;  %v2890_v9 = vpop.f32.mrb[21].mxu0 }
 0x2b0   :  { %v2931_v10 = vpop.f32.mrb[21].mxu1  ;;  %v2891_v11 = vadd.f32 %v2890_v9, %v2850_v23  ;;  %v2892_v12 = vpop.f32.mrb[22].mxu0 }
 0x2b1   :  { %v2933_v61 = vpop.f32.mrb[22].mxu1  ;;  %v2930_v50 = vadd.f32 %v2929_v4, %v2889_v5  ;;  %v2893_v14 = vpop.f32.mrb[23].mxu0 }
 0x2b2   :  { %v2934_v0 = vpop.f32.mrb[23].mxu1  ;;  %v2932_v15 = vadd.f32 %v2931_v10, %v2891_v11 }
 0x2b3   :  { %v2960_v16 = vadd.f32 %v2949_v8, %v2930_v50 }
 0x2b4   :  { %v2961_v19 = vadd.f32 %v2953_v47, %v2932_v15 }
 0x2b5   :  { %v2964_v20 = vmax.f32 %v2960_v16, 0.0 }
 0x2b6   :  { %v2965_v21 = vmax.f32 %v2961_v19, 0.0 }
 0x2b7   :  { %v2968_v27 = vpack.c.bf16 %v2964_v20, %v2964_v20 }
 0x2b8   :  { %v2969_v26 = vpack.c.bf16 %v2965_v21, %v2965_v21 }
 0x2ba   :  { %3305 = vmatprep.mubr.bf16.mxu1 %v2969_v26 }
 0x2bb   :  { %3306 = vmatmul.mubr.bf16.vlgmr.msra.gmra.mrb[24].mxu1 %v2968_v27 }
 0x34c   :  { %v3790_v28 = vpop.f32.mrb[24].mxu0 }
 0x34d   :  { %v3791_v7 = vpop.f32.mrb[25].mxu0 }
 0x34e   :  { %v3792_v13 = vadd.f32 %v3791_v7, %v3790_v28  ;;  %v3793_v29 = vpop.f32.mrb[26].mxu0 }
 0x34f   :  { %v3794_v18 = vpop.f32.mrb[27].mxu0 }
 0x350   :  { %v3268_v32 = vadd.f32 %v3792_v13, %v3741_v51 }
 0x38e   :  { %v3812_v30 = vpop.f32.mrb[24].mxu1 }
 0x38f   :  { %v3813_v31 = vpop.f32.mrb[25].mxu1 }
 0x390   :  { %v3814_v33 = vadd.f32 %v3813_v31, %v3812_v30  ;;  %v3815_v34 = vpop.f32.mrb[26].mxu1 }
 0x391   :  { %v3816_v35 = vpop.f32.mrb[27].mxu1 }
 0x392   :  { %v3308_v36 = vadd.f32 %v3814_v33, %v3268_v32 }
 0x394   :  { %3316 = vmax.xlane.f32.xlu0 %v3308_v36 }
 0x421   :  { %v3317_v38 = vpop.xlane.xlu0 %3316 }
 0x422   :  { %v3318_v39 = vsub.f32 %v3308_v36, %v3317_v38 }
 0x424   :  { %v3319_v40 = vmul.f32 1.442695, %v3318_v39 }
 0x426   :  { %4448 = vpow2.f32 %v3319_v40 }
 0x430   :  { %v4449_v22 = vpop.eup %4448 }
 0x431   :  { %v3321_v42 = vsel %vm3315_vm0, %v4449_v22, 0.0 }
 0x432   :  { %3322 = vadd.xlane.f32.xlu0 %v3321_v42 }
 0x4bf   :  { %v3323_v1 = vpop.xlane.xlu0 %3322 }
 0x4c0   :  { %4450 = vrcp.f32 %v3323_v1 }
 0x4ca   :  { %v4451_v25 = vpop.eup %4450 }
 0x4cb   :  { %v3326_v43 = vmul.f32 %v4451_v25, %v3321_v42 }
 0x4cd   :  { %3327 = vst [vmem:[#allocation11] sm:$0xff] %v3326_v43 }
 0x4ce   :  { %4573 = shalt.err (!%p4570_p2)
}
 0x4cf   :  { %s4574_s20 = scalar_lea.hbm %s4831_s7, 128 }
 0x4d0   :  { %p4575_p3 = scmp.ne.s32.totalorder %s4831_s7, %s4574_s20  ;;  %p4578_p4 = scmp.lt.u32.totalorder %s4574_s20, %s4831_s7 }
 0x4d2   :  { %p4580_p5 = pnand %p4578_p4, %p4575_p3 }
 0x4d4   :  { %4583 = shalt.err (!%p4580_p5)
}
 0x4d5   :  { %3337 = dma.vmem_to_hbm [thread:$0]  %s3335_s15, 128, %s4831_s7, [#allocation4]  }
 0x4d6   :  { %4590 = dma.done.wait [#allocation4], 128  }
 0x4d7   :  { %4591 = vsyncadd [#allocation4], 4294967168 }
 0x4d8   :  { %3341 = vsyncpa [#allocation3], 1 }
 0x4d9   :  { %3342 = vsyncpa [#allocation6], 1 }
 0x4da   :  { %3343 = vsyncpa [#allocation9], 1 }
 0x4db   :  { %3344 = vsyncpa [#allocation4], 1 }

</bundles_post_ra>
